<compile_context>
chip_gen: v7x
topology: tpu7x:2x2x1
jax: 0.10.0
libtpu: 0.0.40
codegen_flags: <defaults>
</compile_context>

<pallas_src>
import jax
import jax.numpy as jnp
from jax import lax
from jax.experimental import pallas as pl
from jax.experimental.pallas import tpu as pltpu


_LANE = 128        # lane width: num_classes padded up to this for the out store
_SUBLANE = 8       # sublane granularity for the batch tile
_POOL_CHUNK = 8    # HW sublane-slice reduced per accumulation step


def head_kernel(x_ref, w1_ref, b1_ref, w2_ref, b2_ref, o_ref):
    # x_ref: (tb, HW, C) bf16 feature-map tile (C lane-dense).
    tb, hw, c = x_ref.shape
    n_full = hw // _POOL_CHUNK
    rem = hw - n_full * _POOL_CHUNK

    # AdaptiveAvgPool2d((1,1)) + flatten == mean over HW.  Chunked f32
    # accumulation: the full (tb, HW, C) tile is never materialized in f32.
    acc = jnp.zeros((tb, c), jnp.float32)

    def body(k, a):
        start = pl.multiple_of(k * _POOL_CHUNK, _POOL_CHUNK)
        chunk = x_ref[:, pl.ds(start, _POOL_CHUNK), :].astype(jnp.float32)
        return a + jnp.sum(chunk, axis=1)

    if n_full > 0:
        acc = lax.fori_loop(0, n_full, body, acc, unroll=min(n_full, 8))
    if rem > 0:
        tail = x_ref[:, pl.ds(n_full * _POOL_CHUNK, rem), :].astype(jnp.float32)
        acc = acc + jnp.sum(tail, axis=1)

    pooled = acc * jnp.float32(1.0 / hw)                                # (tb, C)

    # fc1: Linear(C, 256).  Weights resident in VMEM as bf16; math in f32.
    h = jnp.dot(pooled, w1_ref[...].astype(jnp.float32),
                preferred_element_type=jnp.float32) + b1_ref[...]       # (tb, 256)
    h = jnp.maximum(h, 0.0)                                             # ReLU

    # Dropout(0.3): identity in eval mode.

    # fc2: Linear(256, num_classes), padded to 128 lanes -> unmasked vst.
    out = jnp.dot(h, w2_ref[...].astype(jnp.float32),
                  preferred_element_type=jnp.float32) + b2_ref[...]     # (tb, 128)
    o_ref[...] = out.astype(o_ref.dtype)


def _round_up(x, m):
    return ((x + m - 1) // m) * m


def _generation_budgets():
    """Return (x_tile_budget_bytes, vmem_limit_bytes), generation-aware."""
    kind = ""
    try:
        kind = jax.devices()[0].device_kind.lower()
    except Exception:
        pass
    if ("v5" in kind) or ("v6" in kind):
        # v5e/v5p/v6e: 128 MiB physical VMEM -> big double-buffered x tiles.
        return 28 * 1024 * 1024, 96 * 1024 * 1024
    # v7x (64 MiB VMEM per TensorCore) or unknown backend: conservative.
    return 14 * 1024 * 1024, 48 * 1024 * 1024


def _pick_batch_tile(batch, hw, c, itemsize, budget_bytes):
    """Largest multiple-of-8 batch tile whose x block stays <= budget_bytes,
    forced to >= 2 grid tiles when the batch allows it (v7x has 2 TCs)."""
    per_sample = max(hw * c * itemsize, 1)
    cap = max(_SUBLANE, (budget_bytes // per_sample) // _SUBLANE * _SUBLANE)
    b8 = _round_up(batch, _SUBLANE)
    if b8 >= 2 * _SUBLANE:
        cap = min(cap, _round_up(pl.cdiv(b8, 2), _SUBLANE))
    n_tiles = pl.cdiv(b8, cap)
    return _round_up(pl.cdiv(b8, n_tiles), _SUBLANE)


def custom_model_head(features_nhwc, w1, b1, w2, b2):
    """Head of CustomModel.forward() after the backbone.

    features_nhwc: (B, H, W, C) backbone feature map, NHWC (TPU-native backbone
                   output layout), ideally already bf16 (no relayout/cast copy).
    w1: (256, C) fc1 weight; b1: (256,); w2: (num_classes, 256); b2: (num_classes,).
    Returns (B, num_classes) float32.
    """
    B, H, W, C = features_nhwc.shape
    HW = H * W
    hidden = w1.shape[0]
    num_classes = w2.shape[0]
    n_pad = _round_up(max(num_classes, 1), _LANE)

    # bf16 over HBM halves the dominant read; no-op if the backbone already
    # emits bf16 (as in the demo below).
    x = features_nhwc
    if x.dtype != jnp.bfloat16:
        x = x.astype(jnp.bfloat16)
    # Contiguous dim-collapse: free, no data movement.
    x = x.reshape(B, HW, C)

    budget_bytes, vmem_limit = _generation_budgets()
    tb = _pick_batch_tile(B, HW, C, x.dtype.itemsize, budget_bytes)
    b_pad = _round_up(B, tb)
    if b_pad != B:
        x = jnp.pad(x, ((0, b_pad - B), (0, 0), (0, 0)))

    # Weights: bf16 resident in VMEM (math stays f32 in-kernel); biases f32.
    w1_t = w1.T.astype(jnp.bfloat16)                               # (C, hidden)
    b1_2d = b1.reshape(1, hidden).astype(jnp.float32)              # (1, hidden)
    w2_t = jnp.zeros((hidden, n_pad), jnp.bfloat16).at[:, :num_classes].set(
        w2.T.astype(jnp.bfloat16))                                 # (hidden, n_pad)
    b2_2d = jnp.zeros((1, n_pad), jnp.float32).at[:, :num_classes].set(
        b2.reshape(1, num_classes).astype(jnp.float32))            # (1, n_pad)

    grid = (b_pad // tb,)
    cost = pl.CostEstimate(
        flops=(b_pad * HW * C                       # pooling adds
               + 2 * b_pad * C * hidden             # fc1
               + 2 * b_pad * hidden * n_pad),       # fc2 (padded)
        transcendentals=0,
        bytes_accessed=(b_pad * HW * C * x.dtype.itemsize
                        + (C * hidden + hidden * n_pad) * 2
                        + (hidden + n_pad) * 4
                        + b_pad * n_pad * 4),
    )

    def invoke(single_buffer_weights):
        if single_buffer_weights:
            def wspec(shape):
                return pl.BlockSpec(shape, lambda i: (0, 0),
                                    pipeline_mode=pl.Buffered(1))
        else:
            def wspec(shape):
                return pl.BlockSpec(shape, lambda i: (0, 0))
        return pl.pallas_call(
            head_kernel,
            out_shape=jax.ShapeDtypeStruct((b_pad, n_pad), jnp.float32),
            grid=grid,
            in_specs=[
                # x tile: streamed / double-buffered across the batch grid.
                pl.BlockSpec((tb, HW, C), lambda i: (i, 0, 0)),
                # Weights & biases: constant block index -> VMEM-resident.
                wspec((C, hidden)),
                wspec((1, hidden)),
                wspec((hidden, n_pad)),
                wspec((1, n_pad)),
            ],
            out_specs=pl.BlockSpec((tb, n_pad), lambda i: (i, 0)),
            compiler_params=pltpu.CompilerParams(
                dimension_semantics=("parallel",),
                vmem_limit_bytes=vmem_limit,
            ),
            cost_estimate=cost,
        )(x, w1_t, b1_2d, w2_t, b2_2d)

    try:
        # Constant weight blocks don't need double-buffering; freed VMEM goes
        # to a bigger x tile.
        out_pad = invoke(True)
    except Exception:
        # Fallback if pipeline_mode=pl.Buffered(1) is unsupported.
        out_pad = invoke(False)

    return out_pad[:B, :num_classes]


if __name__ == "__main__":
    key = jax.random.PRNGKey(0)
    k_x, k_w1, k_b1, k_w2, k_b2 = jax.random.split(key, 5)

    # Small deterministic stand-in for the backbone output (densenet121 /
    # resnet50 emit a 7x7 spatial feature map); hidden=256, num_classes=1 as
    # in the module.  On TPU the backbone emits NHWC bf16 directly.
    B, H, W, C = 16, 7, 7, 128
    hidden, num_classes = 256, 1

    feats = jax.random.normal(
        k_x, (B, H, W, C), dtype=jnp.float32).astype(jnp.bfloat16)
    w1 = jax.random.normal(k_w1, (hidden, C), dtype=jnp.float32) * 0.05
    b1 = jax.random.normal(k_b1, (hidden,), dtype=jnp.float32) * 0.05
    w2 = jax.random.normal(k_w2, (num_classes, hidden), dtype=jnp.float32) * 0.05
    b2 = jax.random.normal(k_b2, (num_classes,), dtype=jnp.float32) * 0.05

    out = jax.block_until_ready(custom_model_head(feats, w1, b1, w2, b2))

    # Pure-JAX reference of the head math with the same precision treatment
    # (bf16-rounded feature map and fc weights; all arithmetic in f32).
    x_f32 = feats.astype(jnp.float32).reshape(B, H * W, C)
    pooled = x_f32.mean(axis=1)
    w1_q = w1.astype(jnp.bfloat16).astype(jnp.float32)
    w2_q = w2.astype(jnp.bfloat16).astype(jnp.float32)
    ref = jnp.maximum(pooled @ w1_q.T + b1, 0.0) @ w2_q.T + b2

    assert out.shape == (B, num_classes)
    assert jnp.allclose(out, ref, atol=2e-3, rtol=2e-3), (
        float(jnp.max(jnp.abs(out - ref))))

    print("KERNEL_OK")
</pallas_src>

<mosaic_0001>
module attributes {stable_mosaic.version = 11 : i64} {
  func.func @head_kernel(%arg0: i32, %arg1: memref<8x49x128xbf16, #tpu.memory_space<vmem>>, %arg2: memref<128x256xbf16, #tpu.memory_space<vmem>>, %arg3: memref<1x256xf32, #tpu.memory_space<vmem>>, %arg4: memref<256x128xbf16, #tpu.memory_space<vmem>>, %arg5: memref<1x128xf32, #tpu.memory_space<vmem>>, %arg6: memref<8x128xf32, #tpu.memory_space<vmem>>) attributes {dimension_semantics = [#tpu.dimension_semantics<parallel>], iteration_bounds = array<i64: 2>, scalar_prefetch = 0 : i64, scratch_operands = 0 : i64, tpu.core_type = #tpu.core_type<tc>, window_params = [{transform_indices = @transform_0, window_bounds = array<i64: 8, 49, 128>}, {pipeline_mode = #tpu.pipeline_mode<synchronous>, transform_indices = @transform_1, window_bounds = array<i64: 128, 256>}, {pipeline_mode = #tpu.pipeline_mode<synchronous>, transform_indices = @transform_2, window_bounds = array<i64: 1, 256>}, {pipeline_mode = #tpu.pipeline_mode<synchronous>, transform_indices = @transform_3, window_bounds = array<i64: 256, 128>}, {pipeline_mode = #tpu.pipeline_mode<synchronous>, transform_indices = @transform_4, window_bounds = array<i64: 1, 128>}, {transform_indices = @transform_5, window_bounds = array<i64: 8, 128>}]} {
    %cst = arith.constant 0.000000e+00 : f32
    %0 = vector.broadcast %cst : f32 to vector<8x128xf32>
    %c0_i32 = arith.constant 0 : i32
    %c8_i32 = arith.constant 8 : i32
    %1 = arith.muli %c0_i32, %c8_i32 : i32
    %2 = tpu.assume_multiple %1, 8 : i32
    %c0 = arith.constant 0 : index
    %3 = arith.index_cast %2 : i32 to index
    %c0_0 = arith.constant 0 : index
    %4 = vector.load %arg1[%c0, %3, %c0_0] : memref<8x49x128xbf16, #tpu.memory_space<vmem>>, vector<8x8x128xbf16>
    %5 = arith.extf %4 : vector<8x8x128xbf16> to vector<8x8x128xf32>
    %cst_1 = arith.constant dense<0.000000e+00> : vector<8x128xf32>
    %6 = vector.multi_reduction <add>, %5, %cst_1 [1] : vector<8x8x128xf32> to vector<8x128xf32>
    %7 = arith.addf %0, %6 : vector<8x128xf32>
    %c1_i32 = arith.constant 1 : i32
    %c8_i32_2 = arith.constant 8 : i32
    %8 = arith.muli %c1_i32, %c8_i32_2 : i32
    %9 = tpu.assume_multiple %8, 8 : i32
    %c0_3 = arith.constant 0 : index
    %10 = arith.index_cast %9 : i32 to index
    %c0_4 = arith.constant 0 : index
    %11 = vector.load %arg1[%c0_3, %10, %c0_4] : memref<8x49x128xbf16, #tpu.memory_space<vmem>>, vector<8x8x128xbf16>
    %12 = arith.extf %11 : vector<8x8x128xbf16> to vector<8x8x128xf32>
    %cst_5 = arith.constant dense<0.000000e+00> : vector<8x128xf32>
    %13 = vector.multi_reduction <add>, %12, %cst_5 [1] : vector<8x8x128xf32> to vector<8x128xf32>
    %14 = arith.addf %7, %13 : vector<8x128xf32>
    %c2_i32 = arith.constant 2 : i32
    %c8_i32_6 = arith.constant 8 : i32
    %15 = arith.muli %c2_i32, %c8_i32_6 : i32
    %16 = tpu.assume_multiple %15, 8 : i32
    %c0_7 = arith.constant 0 : index
    %17 = arith.index_cast %16 : i32 to index
    %c0_8 = arith.constant 0 : index
    %18 = vector.load %arg1[%c0_7, %17, %c0_8] : memref<8x49x128xbf16, #tpu.memory_space<vmem>>, vector<8x8x128xbf16>
    %19 = arith.extf %18 : vector<8x8x128xbf16> to vector<8x8x128xf32>
    %cst_9 = arith.constant dense<0.000000e+00> : vector<8x128xf32>
    %20 = vector.multi_reduction <add>, %19, %cst_9 [1] : vector<8x8x128xf32> to vector<8x128xf32>
    %21 = arith.addf %14, %20 : vector<8x128xf32>
    %c3_i32 = arith.constant 3 : i32
    %c8_i32_10 = arith.constant 8 : i32
    %22 = arith.muli %c3_i32, %c8_i32_10 : i32
    %23 = tpu.assume_multiple %22, 8 : i32
    %c0_11 = arith.constant 0 : index
    %24 = arith.index_cast %23 : i32 to index
    %c0_12 = arith.constant 0 : index
    %25 = vector.load %arg1[%c0_11, %24, %c0_12] : memref<8x49x128xbf16, #tpu.memory_space<vmem>>, vector<8x8x128xbf16>
    %26 = arith.extf %25 : vector<8x8x128xbf16> to vector<8x8x128xf32>
    %cst_13 = arith.constant dense<0.000000e+00> : vector<8x128xf32>
    %27 = vector.multi_reduction <add>, %26, %cst_13 [1] : vector<8x8x128xf32> to vector<8x128xf32>
    %28 = arith.addf %21, %27 : vector<8x128xf32>
    %c4_i32 = arith.constant 4 : i32
    %c8_i32_14 = arith.constant 8 : i32
    %29 = arith.muli %c4_i32, %c8_i32_14 : i32
    %30 = tpu.assume_multiple %29, 8 : i32
    %c0_15 = arith.constant 0 : index
    %31 = arith.index_cast %30 : i32 to index
    %c0_16 = arith.constant 0 : index
    %32 = vector.load %arg1[%c0_15, %31, %c0_16] : memref<8x49x128xbf16, #tpu.memory_space<vmem>>, vector<8x8x128xbf16>
    %33 = arith.extf %32 : vector<8x8x128xbf16> to vector<8x8x128xf32>
    %cst_17 = arith.constant dense<0.000000e+00> : vector<8x128xf32>
    %34 = vector.multi_reduction <add>, %33, %cst_17 [1] : vector<8x8x128xf32> to vector<8x128xf32>
    %35 = arith.addf %28, %34 : vector<8x128xf32>
    %c5_i32 = arith.constant 5 : i32
    %c8_i32_18 = arith.constant 8 : i32
    %36 = arith.muli %c5_i32, %c8_i32_18 : i32
    %37 = tpu.assume_multiple %36, 8 : i32
    %c0_19 = arith.constant 0 : index
    %38 = arith.index_cast %37 : i32 to index
    %c0_20 = arith.constant 0 : index
    %39 = vector.load %arg1[%c0_19, %38, %c0_20] : memref<8x49x128xbf16, #tpu.memory_space<vmem>>, vector<8x8x128xbf16>
    %40 = arith.extf %39 : vector<8x8x128xbf16> to vector<8x8x128xf32>
    %cst_21 = arith.constant dense<0.000000e+00> : vector<8x128xf32>
    %41 = vector.multi_reduction <add>, %40, %cst_21 [1] : vector<8x8x128xf32> to vector<8x128xf32>
    %42 = arith.addf %35, %41 : vector<8x128xf32>
    %c6_i32 = arith.constant 6 : i32
    %c0_22 = arith.constant 0 : index
    %c48 = arith.constant 48 : index
    %c0_23 = arith.constant 0 : index
    %43 = vector.load %arg1[%c0_22, %c48, %c0_23] : memref<8x49x128xbf16, #tpu.memory_space<vmem>>, vector<8x1x128xbf16>
    %44 = arith.extf %43 : vector<8x1x128xbf16> to vector<8x1x128xf32>
    %cst_24 = arith.constant dense<0.000000e+00> : vector<8x128xf32>
    %45 = vector.multi_reduction <add>, %44, %cst_24 [1] : vector<8x1x128xf32> to vector<8x128xf32>
    %46 = arith.addf %42, %45 : vector<8x128xf32>
    %cst_25 = arith.constant 0.0204081628 : f32
    %47 = vector.broadcast %cst_25 : f32 to vector<8x128xf32>
    %48 = arith.mulf %46, %47 : vector<8x128xf32>
    %c0_26 = arith.constant 0 : index
    %c0_27 = arith.constant 0 : index
    %49 = vector.load %arg2[%c0_26, %c0_27] : memref<128x256xbf16, #tpu.memory_space<vmem>>, vector<128x256xbf16>
    %50 = arith.extf %49 : vector<128x256xbf16> to vector<128x256xf32>
    %cst_28 = arith.constant dense<0.000000e+00> : vector<8x256xf32>
    %51 = tpu.matmul %48, %50, %cst_28 {dimension_numbers = #tpu.dot_dimension_numbers<[1], [0], [0], [1], [0, 0, 1, 1], [], []>} : vector<8x128xf32>, vector<128x256xf32>, vector<8x256xf32> -> vector<8x256xf32>
    %c0_29 = arith.constant 0 : index
    %c0_30 = arith.constant 0 : index
    %52 = vector.load %arg3[%c0_29, %c0_30] : memref<1x256xf32, #tpu.memory_space<vmem>>, vector<1x256xf32>
    %53 = vector.broadcast %52 : vector<1x256xf32> to vector<8x256xf32>
    %54 = arith.addf %51, %53 : vector<8x256xf32>
    %cst_31 = arith.constant 0.000000e+00 : f32
    %55 = vector.broadcast %cst_31 : f32 to vector<8x256xf32>
    %56 = arith.maximumf %54, %55 : vector<8x256xf32>
    %c0_32 = arith.constant 0 : index
    %c0_33 = arith.constant 0 : index
    %57 = vector.load %arg4[%c0_32, %c0_33] : memref<256x128xbf16, #tpu.memory_space<vmem>>, vector<256x128xbf16>
    %58 = arith.extf %57 : vector<256x128xbf16> to vector<256x128xf32>
    %cst_34 = arith.constant dense<0.000000e+00> : vector<8x128xf32>
    %59 = tpu.matmul %56, %58, %cst_34 {dimension_numbers = #tpu.dot_dimension_numbers<[1], [0], [0], [1], [0, 0, 1, 1], [], []>} : vector<8x256xf32>, vector<256x128xf32>, vector<8x128xf32> -> vector<8x128xf32>
    %c0_35 = arith.constant 0 : index
    %c0_36 = arith.constant 0 : index
    %60 = vector.load %arg5[%c0_35, %c0_36] : memref<1x128xf32, #tpu.memory_space<vmem>>, vector<1x128xf32>
    %61 = vector.broadcast %60 : vector<1x128xf32> to vector<8x128xf32>
    %62 = arith.addf %59, %61 : vector<8x128xf32>
    %c0_37 = arith.constant 0 : index
    %c0_38 = arith.constant 0 : index
    %63 = vector.load %arg6[%c0_37, %c0_38] : memref<8x128xf32, #tpu.memory_space<vmem>>, vector<8x128xf32>
    tpu.vector_store %arg6[%c0_37, %c0_38], %62 {strides = array<i32>} : memref<8x128xf32, #tpu.memory_space<vmem>>, vector<8x128xf32>,
    return
  }
  func.func @transform_0(%arg0: i32) -> (i32, i32, i32) {
    %c0_i32 = arith.constant 0 : i32
    %c0_i32_0 = arith.constant 0 : i32
    %c0_i32_1 = arith.constant 0 : i32
    return %arg0, %c0_i32, %c0_i32_0 : i32, i32, i32
  }
  func.func @transform_1(%arg0: i32) -> (i32, i32) {
    %c0_i32 = arith.constant 0 : i32
    %c0_i32_0 = arith.constant 0 : i32
    %c0_i32_1 = arith.constant 0 : i32
    return %c0_i32, %c0_i32_0 : i32, i32
  }
  func.func @transform_2(%arg0: i32) -> (i32, i32) {
    %c0_i32 = arith.constant 0 : i32
    %c0_i32_0 = arith.constant 0 : i32
    %c0_i32_1 = arith.constant 0 : i32
    return %c0_i32, %c0_i32_0 : i32, i32
  }
  func.func @transform_3(%arg0: i32) -> (i32, i32) {
    %c0_i32 = arith.constant 0 : i32
    %c0_i32_0 = arith.constant 0 : i32
    %c0_i32_1 = arith.constant 0 : i32
    return %c0_i32, %c0_i32_0 : i32, i32
  }
  func.func @transform_4(%arg0: i32) -> (i32, i32) {
    %c0_i32 = arith.constant 0 : i32
    %c0_i32_0 = arith.constant 0 : i32
    %c0_i32_1 = arith.constant 0 : i32
    return %c0_i32, %c0_i32_0 : i32, i32
  }
  func.func @transform_5(%arg0: i32) -> (i32, i32) {
    %c0_i32 = arith.constant 0 : i32
    %c0_i32_0 = arith.constant 0 : i32
    return %arg0, %c0_i32 : i32, i32
  }
}

module attributes {stable_mosaic.version = 11 : i64} {
  func.func @head_kernel(%arg0: i32, %arg1: memref<8x49x128xbf16, #tpu.memory_space<vmem>>, %arg2: memref<128x256xbf16, #tpu.memory_space<vmem>>, %arg3: memref<1x256xf32, #tpu.memory_space<vmem>>, %arg4: memref<256x128xbf16, #tpu.memory_space<vmem>>, %arg5: memref<1x128xf32, #tpu.memory_space<vmem>>, %arg6: memref<8x128xf32, #tpu.memory_space<vmem>>) attributes {dimension_semantics = [#tpu.dimension_semantics<parallel>], iteration_bounds = array<i64: 2>, scalar_prefetch = 0 : i64, scratch_operands = 0 : i64, tpu.core_type = #tpu.core_type<tc>, window_params = [{transform_indices = @transform_0, window_bounds = array<i64: 8, 49, 128>}, {pipeline_mode = #tpu.pipeline_mode<synchronous>, transform_indices = @transform_1, window_bounds = array<i64: 128, 256>}, {pipeline_mode = #tpu.pipeline_mode<synchronous>, transform_indices = @transform_2, window_bounds = array<i64: 1, 256>}, {pipeline_mode = #tpu.pipeline_mode<synchronous>, transform_indices = @transform_3, window_bounds = array<i64: 256, 128>}, {pipeline_mode = #tpu.pipeline_mode<synchronous>, transform_indices = @transform_4, window_bounds = array<i64: 1, 128>}, {transform_indices = @transform_5, window_bounds = array<i64: 8, 128>}]} {
    %cst = arith.constant 0.000000e+00 : f32
    %0 = vector.broadcast %cst : f32 to vector<8x128xf32>
    %c0_i32 = arith.constant 0 : i32
    %c8_i32 = arith.constant 8 : i32
    %1 = arith.muli %c0_i32, %c8_i32 : i32
    %2 = tpu.assume_multiple %1, 8 : i32
    %c0 = arith.constant 0 : index
    %3 = arith.index_cast %2 : i32 to index
    %c0_0 = arith.constant 0 : index
    %4 = vector.load %arg1[%c0, %3, %c0_0] : memref<8x49x128xbf16, #tpu.memory_space<vmem>>, vector<8x8x128xbf16>
    %5 = arith.extf %4 : vector<8x8x128xbf16> to vector<8x8x128xf32>
    %cst_1 = arith.constant dense<0.000000e+00> : vector<8x128xf32>
    %6 = vector.multi_reduction <add>, %5, %cst_1 [1] : vector<8x8x128xf32> to vector<8x128xf32>
    %7 = arith.addf %0, %6 : vector<8x128xf32>
    %c1_i32 = arith.constant 1 : i32
    %c8_i32_2 = arith.constant 8 : i32
    %8 = arith.muli %c1_i32, %c8_i32_2 : i32
    %9 = tpu.assume_multiple %8, 8 : i32
    %c0_3 = arith.constant 0 : index
    %10 = arith.index_cast %9 : i32 to index
    %c0_4 = arith.constant 0 : index
    %11 = vector.load %arg1[%c0_3, %10, %c0_4] : memref<8x49x128xbf16, #tpu.memory_space<vmem>>, vector<8x8x128xbf16>
    %12 = arith.extf %11 : vector<8x8x128xbf16> to vector<8x8x128xf32>
    %cst_5 = arith.constant dense<0.000000e+00> : vector<8x128xf32>
    %13 = vector.multi_reduction <add>, %12, %cst_5 [1] : vector<8x8x128xf32> to vector<8x128xf32>
    %14 = arith.addf %7, %13 : vector<8x128xf32>
    %c2_i32 = arith.constant 2 : i32
    %c8_i32_6 = arith.constant 8 : i32
    %15 = arith.muli %c2_i32, %c8_i32_6 : i32
    %16 = tpu.assume_multiple %15, 8 : i32
    %c0_7 = arith.constant 0 : index
    %17 = arith.index_cast %16 : i32 to index
    %c0_8 = arith.constant 0 : index
    %18 = vector.load %arg1[%c0_7, %17, %c0_8] : memref<8x49x128xbf16, #tpu.memory_space<vmem>>, vector<8x8x128xbf16>
    %19 = arith.extf %18 : vector<8x8x128xbf16> to vector<8x8x128xf32>
    %cst_9 = arith.constant dense<0.000000e+00> : vector<8x128xf32>
    %20 = vector.multi_reduction <add>, %19, %cst_9 [1] : vector<8x8x128xf32> to vector<8x128xf32>
    %21 = arith.addf %14, %20 : vector<8x128xf32>
    %c3_i32 = arith.constant 3 : i32
    %c8_i32_10 = arith.constant 8 : i32
    %22 = arith.muli %c3_i32, %c8_i32_10 : i32
    %23 = tpu.assume_multiple %22, 8 : i32
    %c0_11 = arith.constant 0 : index
    %24 = arith.index_cast %23 : i32 to index
    %c0_12 = arith.constant 0 : index
    %25 = vector.load %arg1[%c0_11, %24, %c0_12] : memref<8x49x128xbf16, #tpu.memory_space<vmem>>, vector<8x8x128xbf16>
    %26 = arith.extf %25 : vector<8x8x128xbf16> to vector<8x8x128xf32>
    %cst_13 = arith.constant dense<0.000000e+00> : vector<8x128xf32>
    %27 = vector.multi_reduction <add>, %26, %cst_13 [1] : vector<8x8x128xf32> to vector<8x128xf32>
    %28 = arith.addf %21, %27 : vector<8x128xf32>
    %c4_i32 = arith.constant 4 : i32
    %c8_i32_14 = arith.constant 8 : i32
    %29 = arith.muli %c4_i32, %c8_i32_14 : i32
    %30 = tpu.assume_multiple %29, 8 : i32
    %c0_15 = arith.constant 0 : index
    %31 = arith.index_cast %30 : i32 to index
    %c0_16 = arith.constant 0 : index
    %32 = vector.load %arg1[%c0_15, %31, %c0_16] : memref<8x49x128xbf16, #tpu.memory_space<vmem>>, vector<8x8x128xbf16>
    %33 = arith.extf %32 : vector<8x8x128xbf16> to vector<8x8x128xf32>
    %cst_17 = arith.constant dense<0.000000e+00> : vector<8x128xf32>
    %34 = vector.multi_reduction <add>, %33, %cst_17 [1] : vector<8x8x128xf32> to vector<8x128xf32>
    %35 = arith.addf %28, %34 : vector<8x128xf32>
    %c5_i32 = arith.constant 5 : i32
    %c8_i32_18 = arith.constant 8 : i32
    %36 = arith.muli %c5_i32, %c8_i32_18 : i32
    %37 = tpu.assume_multiple %36, 8 : i32
    %c0_19 = arith.constant 0 : index
    %38 = arith.index_cast %37 : i32 to index
    %c0_20 = arith.constant 0 : index
    %39 = vector.load %arg1[%c0_19, %38, %c0_20] : memref<8x49x128xbf16, #tpu.memory_space<vmem>>, vector<8x8x128xbf16>
    %40 = arith.extf %39 : vector<8x8x128xbf16> to vector<8x8x128xf32>
    %cst_21 = arith.constant dense<0.000000e+00> : vector<8x128xf32>
    %41 = vector.multi_reduction <add>, %40, %cst_21 [1] : vector<8x8x128xf32> to vector<8x128xf32>
    %42 = arith.addf %35, %41 : vector<8x128xf32>
    %c6_i32 = arith.constant 6 : i32
    %c0_22 = arith.constant 0 : index
    %c48 = arith.constant 48 : index
    %c0_23 = arith.constant 0 : index
    %43 = vector.load %arg1[%c0_22, %c48, %c0_23] : memref<8x49x128xbf16, #tpu.memory_space<vmem>>, vector<8x1x128xbf16>
    %44 = arith.extf %43 : vector<8x1x128xbf16> to vector<8x1x128xf32>
    %cst_24 = arith.constant dense<0.000000e+00> : vector<8x128xf32>
    %45 = vector.multi_reduction <add>, %44, %cst_24 [1] : vector<8x1x128xf32> to vector<8x128xf32>
    %46 = arith.addf %42, %45 : vector<8x128xf32>
    %cst_25 = arith.constant 0.0204081628 : f32
    %47 = vector.broadcast %cst_25 : f32 to vector<8x128xf32>
    %48 = arith.mulf %46, %47 : vector<8x128xf32>
    %c0_26 = arith.constant 0 : index
    %c0_27 = arith.constant 0 : index
    %49 = vector.load %arg2[%c0_26, %c0_27] : memref<128x256xbf16, #tpu.memory_space<vmem>>, vector<128x256xbf16>
    %50 = arith.extf %49 : vector<128x256xbf16> to vector<128x256xf32>
    %cst_28 = arith.constant dense<0.000000e+00> : vector<8x256xf32>
    %51 = tpu.matmul %48, %50, %cst_28 {dimension_numbers = #tpu.dot_dimension_numbers<[1], [0], [0], [1], [0, 0, 1, 1], [], []>} : vector<8x128xf32>, vector<128x256xf32>, vector<8x256xf32> -> vector<8x256xf32>
    %c0_29 = arith.constant 0 : index
    %c0_30 = arith.constant 0 : index
    %52 = vector.load %arg3[%c0_29, %c0_30] : memref<1x256xf32, #tpu.memory_space<vmem>>, vector<1x256xf32>
    %53 = vector.broadcast %52 : vector<1x256xf32> to vector<8x256xf32>
    %54 = arith.addf %51, %53 : vector<8x256xf32>
    %cst_31 = arith.constant 0.000000e+00 : f32
    %55 = vector.broadcast %cst_31 : f32 to vector<8x256xf32>
    %56 = arith.maximumf %54, %55 : vector<8x256xf32>
    %c0_32 = arith.constant 0 : index
    %c0_33 = arith.constant 0 : index
    %57 = vector.load %arg4[%c0_32, %c0_33] : memref<256x128xbf16, #tpu.memory_space<vmem>>, vector<256x128xbf16>
    %58 = arith.extf %57 : vector<256x128xbf16> to vector<256x128xf32>
    %cst_34 = arith.constant dense<0.000000e+00> : vector<8x128xf32>
    %59 = tpu.matmul %56, %58, %cst_34 {dimension_numbers = #tpu.dot_dimension_numbers<[1], [0], [0], [1], [0, 0, 1, 1], [], []>} : vector<8x256xf32>, vector<256x128xf32>, vector<8x128xf32> -> vector<8x128xf32>
    %c0_35 = arith.constant 0 : index
    %c0_36 = arith.constant 0 : index
    %60 = vector.load %arg5[%c0_35, %c0_36] : memref<1x128xf32, #tpu.memory_space<vmem>>, vector<1x128xf32>
    %61 = vector.broadcast %60 : vector<1x128xf32> to vector<8x128xf32>
    %62 = arith.addf %59, %61 : vector<8x128xf32>
    %c0_37 = arith.constant 0 : index
    %c0_38 = arith.constant 0 : index
    %63 = vector.load %arg6[%c0_37, %c0_38] : memref<8x128xf32, #tpu.memory_space<vmem>>, vector<8x128xf32>
    tpu.vector_store %arg6[%c0_37, %c0_38], %62 {strides = array<i32>} : memref<8x128xf32, #tpu.memory_space<vmem>>, vector<8x128xf32>,
    return
  }
  func.func @transform_0(%arg0: i32) -> (i32, i32, i32) {
    %c0_i32 = arith.constant 0 : i32
    %c0_i32_0 = arith.constant 0 : i32
    %c0_i32_1 = arith.constant 0 : i32
    return %arg0, %c0_i32, %c0_i32_0 : i32, i32, i32
  }
  func.func @transform_1(%arg0: i32) -> (i32, i32) {
    %c0_i32 = arith.constant 0 : i32
    %c0_i32_0 = arith.constant 0 : i32
    %c0_i32_1 = arith.constant 0 : i32
    return %c0_i32, %c0_i32_0 : i32, i32
  }
  func.func @transform_2(%arg0: i32) -> (i32, i32) {
    %c0_i32 = arith.constant 0 : i32
    %c0_i32_0 = arith.constant 0 : i32
    %c0_i32_1 = arith.constant 0 : i32
    return %c0_i32, %c0_i32_0 : i32, i32
  }
  func.func @transform_3(%arg0: i32) -> (i32, i32) {
    %c0_i32 = arith.constant 0 : i32
    %c0_i32_0 = arith.constant 0 : i32
    %c0_i32_1 = arith.constant 0 : i32
    return %c0_i32, %c0_i32_0 : i32, i32
  }
  func.func @transform_4(%arg0: i32) -> (i32, i32) {
    %c0_i32 = arith.constant 0 : i32
    %c0_i32_0 = arith.constant 0 : i32
    %c0_i32_1 = arith.constant 0 : i32
    return %c0_i32, %c0_i32_0 : i32, i32
  }
  func.func @transform_5(%arg0: i32) -> (i32, i32) {
    %c0_i32 = arith.constant 0 : i32
    %c0_i32_0 = arith.constant 0 : i32
    return %arg0, %c0_i32 : i32, i32
  }
}

</mosaic_0001>

<bundles_post_ra>
// kernel: tpu_custom_call.1
= control target key start
LH: loop header
LB: loop body
LE: loop exit
PB: predicated region body
PF: predicated region fallthrough
CT: control target
= control target key end

     0   :  { %10 = vsyncpa [#allocation3], 0  ;;  %s1949_s0 = inlined_call_operand.vmem [shape: bf16[16,49,128], index: 0, kind: input, shape index: {}]   ;;  %s1950_s1 = inlined_call_operand.vmem [shape: bf16[128,256], index: 1, kind: input, shape index: {}]   ;;  %s1951_s2 = inlined_call_operand.vmem [shape: f32[1,256], index: 2, kind: input, shape index: {}]   ;;  %s1952_s3 = inlined_call_operand.vmem [shape: bf16[256,128], index: 3, kind: input, shape index: {}]   ;;  %s1953_s4 = inlined_call_operand.vmem [shape: f32[1,128], index: 4, kind: input, shape index: {}]   ;;  %s1954_s5 = inlined_call_operand.hbm [shape: f32[16,128], index: 5, kind: output, shape index: {}]  }
   0x1   :  { %12 = vsyncpa [#allocation3 + $0x1], 0  ;;  %s1490_s18 = smov 0   ;;  %s1492_s19 = smov 0  }
   0x2   :  { %s1494_s20 = smov 0   ;;  %s1496_s21 = smov 0  }
   0x3 LB: > { %s1511_s22 = sadd.s32 4294967295, %s1456_s21   ;;  %s1083_s23 = sadd.s32 4294967294, %s1456_s21   ;;  %s1456_s21 = sphi %s1496_s21, %s1960_s21   ;;  %s1452_s20 = sphi %s1494_s20, %s1959_s20   ;;  %s1448_s19 = sphi %s1492_s19, %s1958_s19   ;;  %s1444_s18 = sphi %s1490_s18, %s1957_s18  }
   0x4   : > { %s1515_s24 = sadd.s32 1, %s1456_s21   ;;  %s135_s25 = sadd.s32 1, %s1452_s20 }
   0x5   : > { %s132_s26 = ssub.s32 %s1456_s21, %s1515_s24  ;;  %p145_p0 = scmp.ne.s32.totalorder %s1452_s20, %s1448_s19 }
   0x6   : > { %p133_p1 = scmp.eq.s32.totalorder %s132_s26, 0  ;;  %p146_p2 = scmp.eq.s32.totalorder %s1511_s22, 1 }
   0x7   : > { %p151_p3 = scmp.ne.s32.totalorder %s1448_s19, %s1444_s18  ;;  %p152_p4 = scmp.eq.s32.totalorder %s1083_s23, 1 }
   0x8   : > { %s1526_s27 = scalar_select %p133_p1, %s1452_s20, %s135_s25  }
   0x9   : > { %p1528_p5 = por %p146_p2, %p145_p0  ;;  %p1532_p6 = por %p152_p4, %p151_p3 }
   0xa   : > { %p1086_p7 = scmp.ge.s32.totalorder %s1456_s21, 1  ;;  %p192_p8 = scmp.lt.s32.totalorder %s1456_s21, 3 }
   0xc   : > { %p193_p9 = pnand %p1086_p7, %p192_p8 }
   0xd   : > { %v1370_v0 = vld [vmem:[%s1950_s1 + $0x4] ss:$8 sps:$4 sm:$0xff] (!%p193_p9)   ;;  %s1088_s7 = sshll.u32 (!%p193_p9), %s1511_s22, 3  ;;  %v1372_v1 = vld [vmem:[%s1950_s1] ss:$8 sps:$4 sm:$0xff] (!%p193_p9)   ;;  %v1458_v2 = vmov (!%p193_p9), 0.0  }
   0xe   : > { %196 = sbr.rel (%p193_p9) target bundleno = 584 (0x248), region = 40  ;;  %859 = vmatprep.mubr.f32.mxu0 (!%p193_p9), %v1458_v2  ;;  %p222_p10 = scmp.lt.s32.totalorder (!%p193_p9), %s1088_s7, 15  ;;  %1250 = vmatprep.subr.bf16.mxu0 (!%p193_p9), %v1370_v0  ;;  %v1373_v3 = vld [vmem:[%s1950_s1 + $0x14] ss:$8 sps:$4 sm:$0xff] (!%p193_p9)   ;;  %v1375_v4 = vld [vmem:[%s1950_s1 + $0x10] ss:$8 sps:$4 sm:$0xff] (!%p193_p9)  }
   0xf   : > { %1252 = vmatpush1.bf16.msra.mxu0 (!%p193_p9), %v1372_v1  ;;  %v1376_v5 = vld [vmem:[%s1950_s1 + $0x24] ss:$8 sps:$4 sm:$0xff] (!%p193_p9)   ;;  %v1378_v6 = vld [vmem:[%s1950_s1 + $0x20] ss:$8 sps:$4 sm:$0xff] (!%p193_p9)   ;;  %v1379_v7 = vld [vmem:[%s1950_s1 + $0x34] ss:$8 sps:$4 sm:$0xff] (!%p193_p9)  }
  0x10   : > { %1254 = vmatprep.subr.bf16.mxu0 (!%p193_p9), %v1373_v3  ;;  %v1381_v8 = vld [vmem:[%s1950_s1 + $0x30] ss:$8 sps:$4 sm:$0xff] (!%p193_p9)   ;;  %v1382_v9 = vld [vmem:[%s1950_s1 + $0x44] ss:$8 sps:$4 sm:$0xff] (!%p193_p9)   ;;  %v1384_v32 = vld [vmem:[%s1950_s1 + $0x40] ss:$8 sps:$4 sm:$0xff] (!%p193_p9)  }
  0x11   : > { %v1385_v37 = vld [vmem:[%s1950_s1 + $0x54] ss:$8 sps:$4 sm:$0xff] (!%p193_p9)   ;;  %v1206_v50 = vld [vmem:[%s1952_s3 + $0x40] sm:$0xff] (!%p193_p9)   ;;  %v1387_v51 = vld [vmem:[%s1950_s1 + $0x50] ss:$8 sps:$4 sm:$0xff] (!%p193_p9)   ;;  %vm774_vm0 = vcmask (!%p193_p9), 1041409  }
  0x12   : > { %1282 = vmatprep.subr.bf16.mxu1 (!%p193_p9), %v1206_v50  ;;  %v1136_v56 = vld [vmem:[%s1952_s3] sm:$0xff] (!%p193_p9)   ;;  %v1207_v62 = vld [vmem:[%s1952_s3 + $0x48] sm:$0xff] (!%p193_p9)   ;;  %vm777_vm1 = vcmask (!%p193_p9), 1042434   ;;  %vm780_vm2 = vcmask (!%p193_p9), 1043459   ;;  %vm783_vm3 = vcmask (!%p193_p9), 1044484   ;;  %vm786_vm4 = vcmask (!%p193_p9), 1045509  }
  0x13   : > { %1256 = vmatpush1.bf16.msra.mxu0 (!%p193_p9), %v1375_v4  ;;  %v1388_v57 = vld [vmem:[%s1950_s1 + $0x64] ss:$8 sps:$4 sm:$0xff] (!%p193_p9)   ;;  %1284 = vmatpush3.bf16.msra.mxu1 (!%p193_p9), %v1136_v56  ;;  %vm789_vm5 = vcmask (!%p193_p9), 1046534   ;;  %vm792_vm6 = vcmask (!%p193_p9), 1047559   ;;  %s218_s14 = sand.u32 (!%p193_p9), 1, %s1448_s19   ;;  %s1132_s23 = sshll.u32 (!%p193_p9), %s1511_s22, 7 }
  0x14   : > { %1258 = vmatprep.subr.bf16.mxu0 (!%p193_p9), %v1376_v5  ;;  %1286 = vmatprep.subr.bf16.mxu1 (!%p193_p9), %v1207_v62  ;;  %v1199_v3 = vld [vmem:[%s1952_s3 + $0x8] sm:$0xff] (!%p193_p9)   ;;  %s1087_s15 = sshll.u32 (!%p193_p9), %s218_s14, 3  ;;  %s1907_s6 = scalar_lea.hbm (!%p193_p9), %s1954_s5, %s1132_s23 }
  0x15   : > { %s1962_s7 = smov (!%p222_p10, %s1088_s7), 15  ;;  %s220_s25 = scalar_lea.vmem [#allocation2], %s1087_s15 }
  0x16   : > { %s1329_s16 = smul.u32 28, %s1962_s7  ;;  %s1024_s26 = sshll.u32 %s220_s25, 4  ;;  %s1909_s26 = int_to_ptr.vmem [resolvable:$true] %s1024_s26 }
  0x17   : > { %1260 = vmatpush1.bf16.msra.mxu0 %v1378_v6  ;;  %1288 = vmatpush3.bf16.msra.mxu1 %v1199_v3  ;;  %s1011_s9 = scalar_lea.sflag [#allocation3], %s218_s14  ;;  %s1394_s10 = scalar_lea.vmem %s1909_s26, 128 }
  0x18   : > { %s1563_s8 = scalar_lea.vmem %s1949_s0, %s1329_s16  ;;  %1262 = vmatprep.subr.bf16.mxu0 %v1379_v7  ;;  %p1395_p11 = scmp.ne.s32.totalorder %s1909_s26, %s1394_s10 }
  0x19   : > { %v1572_v10 = vld [vmem:[%s1563_s8] sm:$0xff]   ;;  %v1578_v12 = vld [vmem:[%s1563_s8 + $0x38] sm:$0xff]   ;;  %v1586_v16 = vld [vmem:[%s1563_s8 + $0x70] sm:$0xff]   ;;  %s1459_s22 = smov [#allocation2]  }
  0x1a   : > { %v1575_v11 = vld [vmem:[%s1563_s8 + $0x1c] sm:$0xff]   ;;  %v1581_v13 = vld [vmem:[%s1563_s8 + $0x54] sm:$0xff]   ;;  %v236_v14 = vunpack.c.l.bf16 %v1572_v10  ;;  %v309_v15 = vunpack.c.h.bf16 %v1572_v10  ;;  %v1589_v17 = vld [vmem:[%s1563_s8 + $0x8c] sm:$0xff]   ;;  %v238_v20 = vunpack.c.l.bf16 %v1578_v12  ;;  %v240_v24 = vunpack.c.l.bf16 %v1586_v16  ;;  %p1396_p12 = pnand %p1395_p11, %p1528_p5  ;;  %s1398_s7 = sshll.u32 %s1459_s22, 4  ;;  %s1399_s7 = int_to_ptr.vmem [resolvable:$false] %s1398_s7 }
  0x1b   : > { %v1592_v18 = vld [vmem:[%s1563_s8 + $0xa8] sm:$0xff]   ;;  %v237_v19 = vunpack.c.l.bf16 %v1575_v11  ;;  %v239_v21 = vunpack.c.l.bf16 %v1581_v13  ;;  %v310_v22 = vunpack.c.h.bf16 %v1575_v11  ;;  %v241_v25 = vunpack.c.l.bf16 %v1589_v17  ;;  %1264 = vmatpush1.bf16.msra.mxu0 %v1381_v8  ;;  %v1208_v8 = vld [vmem:[%s1952_s3 + $0x50] sm:$0xff]   ;;  %s1400_s11 = scalar_lea.vmem %s1399_s7, 256  ;;  %p1401_p0 = scmp.lt.s32.totalorder %s1909_s26, %s1399_s7 }
  0x1c   : > { %v1599_v23 = vld [vmem:[%s1563_s8 + $0xc4] sm:$0xff]   ;;  %v242_v26 = vunpack.c.l.bf16 %v1592_v18  ;;  %v244_v27 = vrot.slane %v236_v14, 4  ;;  %v256_v30 = vrot.slane %v238_v20, 4  ;;  %v268_v34 = vrot.slane %v240_v24, 4  ;;  %1266 = vmatprep.subr.bf16.mxu0 %v1382_v9  ;;  %1290 = vmatprep.subr.bf16.mxu1 %v1208_v8  ;;  %p1397_p13 = pneg %p1396_p12  ;;  %p1402_p1 = scmp.lt.s32.totalorder %s1400_s11, %s1394_s10 }
  0x1d   : > { %v243_v28 = vunpack.c.l.bf16 %v1599_v23  ;;  %v250_v29 = vrot.slane %v237_v19, 4  ;;  %v262_v31 = vrot.slane %v239_v21, 4  ;;  %v274_v35 = vrot.slane %v241_v25, 4  ;;  %v1390_v9 = vld [vmem:[%s1950_s1 + $0x60] ss:$8 sps:$4 sm:$0xff]  }
  0x1e   : > { %v245_v33 = vadd.f32 %v244_v27, %v236_v14  ;;  %v280_v36 = vrot.slane %v242_v26, 4  ;;  %v257_v39 = vadd.f32 %v256_v30, %v238_v20  ;;  %v269_v43 = vadd.f32 %v268_v34, %v240_v24  ;;  %v1391_v24 = vld [vmem:[%s1950_s1 + $0x74] ss:$8 sps:$4 sm:$0xff]   ;;  %p1403_p2 = por %p1402_p1, %p1401_p0 }
  0x1f   : > { %v251_v38 = vadd.f32 %v250_v29, %v237_v19  ;;  %v263_v40 = vadd.f32 %v262_v31, %v239_v21  ;;  %v286_v41 = vrot.slane %v243_v28, 4  ;;  %v275_v44 = vadd.f32 %v274_v35, %v241_v25  ;;  %1268 = vmatpush1.bf16.msra.mxu0 %v1384_v32 }
  0x20   : > { %v246_v42 = vrot.slane %v245_v33, 2  ;;  %v281_v45 = vadd.f32 %v280_v36, %v242_v26  ;;  %v258_v47 = vrot.slane %v257_v39, 2  ;;  %v270_v53 = vrot.slane %v269_v43, 2  ;;  %1270 = vmatprep.subr.bf16.mxu0 %v1385_v37  ;;  %p1404_p3 = pnand %p1403_p2, %p1397_p13 }
  0x21   : > { %v252_v46 = vrot.slane %v251_v38, 2  ;;  %v264_v48 = vrot.slane %v263_v40, 2  ;;  %v287_v49 = vadd.f32 %v286_v41, %v243_v28  ;;  %v276_v54 = vrot.slane %v275_v44, 2 }
  0x22   : > { %v247_v52 = vadd.f32 %v246_v42, %v245_v33  ;;  %v282_v55 = vrot.slane %v281_v45, 2  ;;  %v259_v59 = vadd.f32 %v258_v47, %v257_v39  ;;  %v271_v0 = vadd.f32 %v270_v53, %v269_v43  ;;  %v1200_v33 = vld [vmem:[%s1952_s3 + $0x10] sm:$0xff]  }
  0x23   : > { %v253_v58 = vadd.f32 %v252_v46, %v251_v38  ;;  %v265_v60 = vadd.f32 %v264_v48, %v263_v40  ;;  %v288_v61 = vrot.slane %v287_v49, 2  ;;  %v277_v1 = vadd.f32 %v276_v54, %v275_v44  ;;  %1272 = vmatpush1.bf16.msra.mxu0 %v1387_v51  ;;  %v1209_v38 = vld [vmem:[%s1952_s3 + $0x58] sm:$0xff]   ;;  %1292 = vmatpush3.bf16.msra.mxu1 %v1200_v33  ;;  %v1210_v51 = vld [vmem:[%s1952_s3 + $0x60] sm:$0xff]  }
  0x24   : > { %v248_v63 = vrot.slane %v247_v52, 1  ;;  %v283_v2 = vadd.f32 %v282_v55, %v281_v45  ;;  %v260_v5 = vrot.slane %v259_v59, 1  ;;  %v272_v19 = vrot.slane %v271_v0, 1  ;;  %1274 = vmatprep.subr.bf16.mxu0 %v1388_v57  ;;  %1294 = vmatprep.subr.bf16.mxu1 %v1209_v38  ;;  %v1201_v46 = vld [vmem:[%s1952_s3 + $0x18] sm:$0xff]   ;;  %v1696_v38 = vld [vmem:[%s1563_s8 + $0x24] sm:$0xff]  }
  0x25   : > { %v254_v4 = vrot.slane %v253_v58, 1  ;;  %v266_v6 = vrot.slane %v265_v60, 1  ;;  %v289_v7 = vadd.f32 %v288_v61, %v287_v49  ;;  %v278_v20 = vrot.slane %v277_v1, 1 }
  0x26   : > { %v1635_v14 = vadd.f32 %v248_v63, %v247_v52  ;;  %v284_v21 = vrot.slane %v283_v2, 1  ;;  %v1642_v26 = vadd.f32 %v260_v5, %v259_v59  ;;  %v1646_v29 = vadd.f32 %v272_v19, %v271_v0 }
  0x27   : > { %v1640_v25 = vadd.f32 %v254_v4, %v253_v58  ;;  %v1644_v27 = vadd.f32 %v266_v6, %v265_v60  ;;  %v290_v28 = vrot.slane %v289_v7, 1  ;;  %v1648_v30 = vadd.f32 %v278_v20, %v277_v1  ;;  %1276 = vmatpush1.bf16.msra.mxu0 %v1390_v9  ;;  %1296 = vmatpush3.bf16.msra.mxu1 %v1201_v46  ;;  %v1202_v60 = vld [vmem:[%s1952_s3 + $0x20] sm:$0xff]   ;;  %v1211_v1 = vld [vmem:[%s1952_s3 + $0x68] sm:$0xff]  }
  0x28   : > { %v1650_v31 = vadd.f32 %v284_v21, %v283_v2  ;;  %v311_v32 = vunpack.c.h.bf16 %v1578_v12  ;;  %v312_v35 = vunpack.c.h.bf16 %v1581_v13  ;;  %v313_v36 = vunpack.c.h.bf16 %v1586_v16  ;;  %v1393_v12 = vld [vmem:[%s1950_s1 + $0x70] ss:$8 sps:$4 sm:$0xff]   ;;  %1278 = vmatprep.subr.bf16.mxu0 %v1391_v24  ;;  %1298 = vmatprep.subr.bf16.mxu1 %v1210_v51 }
  0x29   : > { %v1656_v34 = vadd.f32 %v290_v28, %v289_v7  ;;  %v314_v37 = vunpack.c.h.bf16 %v1589_v17  ;;  %v315_v39 = vunpack.c.h.bf16 %v1592_v18  ;;  %v316_v40 = vunpack.c.h.bf16 %v1599_v23  ;;  %v1690_v28 = vld [vmem:[%s1563_s8 + $0x8] sm:$0xff]  }
  0x2a   : > { %v317_v13 = vrot.slane %v309_v15, 4  ;;  %v323_v16 = vrot.slane %v310_v22, 4  ;;  %v329_v17 = vrot.slane %v311_v32, 4  ;;  %v335_v41 = vrot.slane %v312_v35, 4 }
  0x2b   : > { %v341_v42 = vrot.slane %v313_v36, 4  ;;  %v347_v43 = vrot.slane %v314_v37, 4  ;;  %v353_v45 = vrot.slane %v315_v39, 4  ;;  %v359_v23 = vrot.slane %v316_v40, 4  ;;  %1280 = vmatpush1.bf16.msra.mxu0 %v1393_v12  ;;  %1300 = vmatpush3.bf16.msra.mxu1 %v1202_v60  ;;  %v1699_v12 = vld [vmem:[%s1563_s8 + $0x40] sm:$0xff]  }
  0x2c   : > { %v318_v44 = vadd.f32 %v317_v13, %v309_v15  ;;  %v324_v18 = vadd.f32 %v323_v16, %v310_v22  ;;  %v330_v47 = vadd.f32 %v329_v17, %v311_v32  ;;  %v336_v48 = vadd.f32 %v335_v41, %v312_v35  ;;  %1302 = vmatprep.subr.bf16.mxu1 %v1211_v1  ;;  %v1203_v32 = vld [vmem:[%s1952_s3 + $0x28] sm:$0xff]   ;;  %v1711_v41 = vld [vmem:[%s1563_s8 + $0x5c] sm:$0xff]  }
  0x2d   : > { %v342_v49 = vadd.f32 %v341_v42, %v313_v36  ;;  %v348_v50 = vadd.f32 %v347_v43, %v314_v37  ;;  %v354_v11 = vadd.f32 %v353_v45, %v315_v39  ;;  %v360_v22 = vadd.f32 %v359_v23, %v316_v40  ;;  %v1212_v39 = vld [vmem:[%s1952_s3 + $0x70] sm:$0xff]   ;;  %v1714_v42 = vld [vmem:[%s1563_s8 + $0x78] sm:$0xff]  }
  0x2e   : > { %v319_v10 = vrot.slane %v318_v44, 2  ;;  %v325_v15 = vrot.slane %v324_v18, 2  ;;  %v331_v52 = vrot.slane %v330_v47, 2  ;;  %v337_v53 = vrot.slane %v336_v48, 2  ;;  %v1717_v43 = vld [vmem:[%s1563_s8 + $0x94] sm:$0xff]   ;;  %v1735_v23 = vld [vmem:[%s1563_s8 + $0xcc] sm:$0xff]  }
  0x2f   : > { %v343_v54 = vrot.slane %v342_v49, 2  ;;  %v349_v55 = vrot.slane %v348_v50, 2  ;;  %v355_v58 = vrot.slane %v354_v11, 2  ;;  %v361_v59 = vrot.slane %v360_v22, 2  ;;  %1304 = vmatpush3.bf16.msra.mxu1 %v1203_v32 }
  0x30   : > { %v320_v56 = vadd.f32 %v319_v10, %v318_v44  ;;  %v326_v57 = vadd.f32 %v325_v15, %v324_v18  ;;  %v332_v61 = vadd.f32 %v331_v52, %v330_v47  ;;  %v338_v62 = vadd.f32 %v337_v53, %v336_v48  ;;  %1306 = vmatprep.subr.bf16.mxu1 %v1212_v39 }
  0x31   : > { %v344_v63 = vadd.f32 %v343_v54, %v342_v49  ;;  %v350_v0 = vadd.f32 %v349_v55, %v348_v50  ;;  %v356_v4 = vadd.f32 %v355_v58, %v354_v11  ;;  %v362_v5 = vadd.f32 %v361_v59, %v360_v22 }
  0x32   : > { %v321_v2 = vrot.slane %v320_v56, 1  ;;  %v327_v3 = vrot.slane %v326_v57, 1  ;;  %v333_v6 = vrot.slane %v332_v61, 1  ;;  %v339_v7 = vrot.slane %v338_v62, 1 }
  0x33   : > { %v345_v8 = vrot.slane %v344_v63, 1  ;;  %v351_v9 = vrot.slane %v350_v0, 1  ;;  %v357_v21 = vrot.slane %v356_v4, 1  ;;  %v363_v24 = vrot.slane %v362_v5, 1 }
  0x34   : > { %v322_v19 = vadd.f32 %v321_v2, %v320_v56  ;;  %v328_v20 = vadd.f32 %v327_v3, %v326_v57  ;;  %v334_v33 = vadd.f32 %v333_v6, %v332_v61  ;;  %v340_v35 = vadd.f32 %v339_v7, %v338_v62 }
  0x35   : > { %v346_v36 = vadd.f32 %v345_v8, %v344_v63  ;;  %v352_v37 = vadd.f32 %v351_v9, %v350_v0  ;;  %v358_v40 = vadd.f32 %v357_v21, %v356_v4  ;;  %v364_v13 = vadd.f32 %v363_v24, %v362_v5 }
  0x36   : > { %v1705_v16 = vadd.f32 %v322_v19, %v1635_v14  ;;  %v1708_v17 = vadd.f32 %v328_v20, %v1640_v25  ;;  %v1720_v44 = vadd.f32 %v334_v33, %v1642_v26  ;;  %v1723_v18 = vadd.f32 %v340_v35, %v1644_v27  ;;  %v1732_v25 = vld [vmem:[%s1563_s8 + $0xb0] sm:$0xff]  }
  0x37   : > { %v1726_v45 = vadd.f32 %v346_v36, %v1646_v29  ;;  %v1729_v14 = vadd.f32 %v352_v37, %v1648_v30  ;;  %v1738_v46 = vadd.f32 %v358_v40, %v1650_v31  ;;  %v1741_v26 = vadd.f32 %v364_v13, %v1656_v34 }
  0x38   : > { %v382_v27 = vunpack.c.l.bf16 %v1690_v28  ;;  %v383_v47 = vunpack.c.l.bf16 %v1696_v38  ;;  %v384_v29 = vunpack.c.l.bf16 %v1699_v12  ;;  %v385_v30 = vunpack.c.l.bf16 %v1711_v41 }
  0x39   : > { %v386_v48 = vunpack.c.l.bf16 %v1714_v42  ;;  %v387_v49 = vunpack.c.l.bf16 %v1717_v43  ;;  %v388_v50 = vunpack.c.l.bf16 %v1732_v25  ;;  %v389_v31 = vunpack.c.l.bf16 %v1735_v23 }
  0x3a   : > { %v390_v51 = vrot.slane %v382_v27, 4  ;;  %v396_v34 = vrot.slane %v383_v47, 4  ;;  %v402_v10 = vrot.slane %v384_v29, 4  ;;  %v408_v15 = vrot.slane %v385_v30, 4 }
  0x3b   : > { %v414_v11 = vrot.slane %v386_v48, 4  ;;  %v420_v22 = vrot.slane %v387_v49, 4  ;;  %v426_v54 = vrot.slane %v388_v50, 4  ;;  %v432_v55 = vrot.slane %v389_v31, 4 }
  0x3c   : > { %v391_v52 = vadd.f32 %v390_v51, %v382_v27  ;;  %v397_v53 = vadd.f32 %v396_v34, %v383_v47  ;;  %v403_v56 = vadd.f32 %v402_v10, %v384_v29  ;;  %v409_v57 = vadd.f32 %v408_v15, %v385_v30 }
  0x3d   : > { %v415_v58 = vadd.f32 %v414_v11, %v386_v48  ;;  %v421_v59 = vadd.f32 %v420_v22, %v387_v49  ;;  %v427_v62 = vadd.f32 %v426_v54, %v388_v50  ;;  %v433_v63 = vadd.f32 %v432_v55, %v389_v31 }
  0x3e   : > { %v392_v60 = vrot.slane %v391_v52, 2  ;;  %v398_v61 = vrot.slane %v397_v53, 2  ;;  %v404_v0 = vrot.slane %v403_v56, 2  ;;  %v410_v1 = vrot.slane %v409_v57, 2 }
  0x3f   : > { %v416_v2 = vrot.slane %v415_v58, 2  ;;  %v422_v3 = vrot.slane %v421_v59, 2  ;;  %v428_v6 = vrot.slane %v427_v62, 2  ;;  %v434_v7 = vrot.slane %v433_v63, 2 }
  0x40   : > { %v393_v4 = vadd.f32 %v392_v60, %v391_v52  ;;  %v399_v5 = vadd.f32 %v398_v61, %v397_v53  ;;  %v405_v8 = vadd.f32 %v404_v0, %v403_v56  ;;  %v411_v9 = vadd.f32 %v410_v1, %v409_v57 }
  0x41   : > { %v417_v19 = vadd.f32 %v416_v2, %v415_v58  ;;  %v423_v20 = vadd.f32 %v422_v3, %v421_v59  ;;  %v429_v32 = vadd.f32 %v428_v6, %v427_v62  ;;  %v435_v33 = vadd.f32 %v434_v7, %v433_v63 }
  0x42   : > { %v394_v21 = vrot.slane %v393_v4, 1  ;;  %v400_v24 = vrot.slane %v399_v5, 1  ;;  %v406_v35 = vrot.slane %v405_v8, 1  ;;  %v412_v36 = vrot.slane %v411_v9, 1 }
  0x43   : > { %v418_v37 = vrot.slane %v417_v19, 1  ;;  %v424_v39 = vrot.slane %v423_v20, 1  ;;  %v430_v27 = vrot.slane %v429_v32, 1  ;;  %v436_v47 = vrot.slane %v435_v33, 1 }
  0x44   : > { %v395_v40 = vadd.f32 %v394_v21, %v393_v4  ;;  %v401_v13 = vadd.f32 %v400_v24, %v399_v5  ;;  %v407_v29 = vadd.f32 %v406_v35, %v405_v8  ;;  %v413_v30 = vadd.f32 %v412_v36, %v411_v9 }
  0x45   : > { %v419_v48 = vadd.f32 %v418_v37, %v417_v19  ;;  %v425_v49 = vadd.f32 %v424_v39, %v423_v20  ;;  %v431_v50 = vadd.f32 %v430_v27, %v429_v32  ;;  %v437_v31 = vadd.f32 %v436_v47, %v435_v33 }
  0x46   : > { %v1752_v51 = vadd.f32 %v395_v40, %v1705_v16  ;;  %v1755_v34 = vadd.f32 %v401_v13, %v1708_v17  ;;  %v1758_v10 = vadd.f32 %v407_v29, %v1720_v44  ;;  %v1761_v15 = vadd.f32 %v413_v30, %v1723_v18 }
  0x47   : > { %v1764_v11 = vadd.f32 %v419_v48, %v1726_v45  ;;  %v1767_v22 = vadd.f32 %v425_v49, %v1729_v14  ;;  %v1770_v52 = vadd.f32 %v431_v50, %v1738_v46  ;;  %v1773_v16 = vadd.f32 %v437_v31, %v1741_v26  ;;  %v1784_v50 = vld [vmem:[%s1563_s8 + $0x10] sm:$0xff]  }
  0x48   : > { %v455_v17 = vunpack.c.h.bf16 %v1690_v28  ;;  %v456_v44 = vunpack.c.h.bf16 %v1696_v38  ;;  %v457_v53 = vunpack.c.h.bf16 %v1699_v12  ;;  %v458_v18 = vunpack.c.h.bf16 %v1711_v41  ;;  %v1787_v31 = vld [vmem:[%s1563_s8 + $0x2c] sm:$0xff]  }
  0x49   : > { %v459_v45 = vunpack.c.h.bf16 %v1714_v42  ;;  %v460_v54 = vunpack.c.h.bf16 %v1717_v43  ;;  %v461_v14 = vunpack.c.h.bf16 %v1732_v25  ;;  %v462_v46 = vunpack.c.h.bf16 %v1735_v23 }
  0x4a   : > { %v463_v55 = vrot.slane %v455_v17, 4  ;;  %v469_v56 = vrot.slane %v456_v44, 4  ;;  %v475_v26 = vrot.slane %v457_v53, 4  ;;  %v481_v57 = vrot.slane %v458_v18, 4 }
  0x4b   : > { %v487_v58 = vrot.slane %v459_v45, 4  ;;  %v493_v28 = vrot.slane %v460_v54, 4  ;;  %v499_v60 = vrot.slane %v461_v14, 4  ;;  %v505_v12 = vrot.slane %v462_v46, 4 }
  0x4c   : > { %v464_v59 = vadd.f32 %v463_v55, %v455_v17  ;;  %v470_v38 = vadd.f32 %v469_v56, %v456_v44  ;;  %v476_v61 = vadd.f32 %v475_v26, %v457_v53  ;;  %v482_v41 = vadd.f32 %v481_v57, %v458_v18  ;;  %v1790_v17 = vld [vmem:[%s1563_s8 + $0x48] sm:$0xff]   ;;  %v1823_v57 = vld [vmem:[%s1563_s8 + $0xd4] sm:$0xff]  }
  0x4d   : > { %v488_v62 = vadd.f32 %v487_v58, %v459_v45  ;;  %v494_v42 = vadd.f32 %v493_v28, %v460_v54  ;;  %v500_v0 = vadd.f32 %v499_v60, %v461_v14  ;;  %v506_v25 = vadd.f32 %v505_v12, %v462_v46  ;;  %v1799_v54 = vld [vmem:[%s1563_s8 + $0x64] sm:$0xff]   ;;  %v1805_v46 = vld [vmem:[%s1563_s8 + $0x9c] sm:$0xff]  }
  0x4e   : > { %v465_v63 = vrot.slane %v464_v59, 2  ;;  %v471_v43 = vrot.slane %v470_v38, 2  ;;  %v477_v1 = vrot.slane %v476_v61, 2  ;;  %v483_v23 = vrot.slane %v482_v41, 2  ;;  %v1802_v14 = vld [vmem:[%s1563_s8 + $0x80] sm:$0xff]  }
  0x4f   : > { %v489_v2 = vrot.slane %v488_v62, 2  ;;  %v495_v3 = vrot.slane %v494_v42, 2  ;;  %v501_v6 = vrot.slane %v500_v0, 2  ;;  %v507_v7 = vrot.slane %v506_v25, 2 }
  0x50   : > { %v466_v4 = vadd.f32 %v465_v63, %v464_v59  ;;  %v472_v5 = vadd.f32 %v471_v43, %v470_v38  ;;  %v478_v8 = vadd.f32 %v477_v1, %v476_v61  ;;  %v484_v9 = vadd.f32 %v483_v23, %v482_v41 }
  0x51   : > { %v490_v19 = vadd.f32 %v489_v2, %v488_v62  ;;  %v496_v20 = vadd.f32 %v495_v3, %v494_v42  ;;  %v502_v32 = vadd.f32 %v501_v6, %v500_v0  ;;  %v508_v33 = vadd.f32 %v507_v7, %v506_v25 }
  0x52   : > { %v467_v21 = vrot.slane %v466_v4, 1  ;;  %v473_v24 = vrot.slane %v472_v5, 1  ;;  %v479_v35 = vrot.slane %v478_v8, 1  ;;  %v485_v36 = vrot.slane %v484_v9, 1 }
  0x53   : > { %v491_v37 = vrot.slane %v490_v19, 1  ;;  %v497_v39 = vrot.slane %v496_v20, 1  ;;  %v503_v27 = vrot.slane %v502_v32, 1  ;;  %v509_v47 = vrot.slane %v508_v33, 1 }
  0x54   : > { %v468_v40 = vadd.f32 %v467_v21, %v466_v4  ;;  %v474_v13 = vadd.f32 %v473_v24, %v472_v5  ;;  %v480_v29 = vadd.f32 %v479_v35, %v478_v8  ;;  %v486_v30 = vadd.f32 %v485_v36, %v484_v9 }
  0x55   : > { %v492_v48 = vadd.f32 %v491_v37, %v490_v19  ;;  %v498_v49 = vadd.f32 %v497_v39, %v496_v20  ;;  %v504_v44 = vadd.f32 %v503_v27, %v502_v32  ;;  %v510_v53 = vadd.f32 %v509_v47, %v508_v33 }
  0x56   : > { %v1793_v18 = vadd.f32 %v468_v40, %v1752_v51  ;;  %v1796_v45 = vadd.f32 %v474_v13, %v1755_v34  ;;  %v1808_v55 = vadd.f32 %v480_v29, %v1758_v10  ;;  %v1811_v56 = vadd.f32 %v486_v30, %v1761_v15  ;;  %v1820_v34 = vld [vmem:[%s1563_s8 + $0xb8] sm:$0xff]  }
  0x57   : > { %v1814_v26 = vadd.f32 %v492_v48, %v1764_v11  ;;  %v1817_v51 = vadd.f32 %v498_v49, %v1767_v22  ;;  %v1826_v58 = vadd.f32 %v504_v44, %v1770_v52  ;;  %v1829_v28 = vadd.f32 %v510_v53, %v1773_v16 }
  0x58   : > { %v528_v10 = vunpack.c.l.bf16 %v1784_v50  ;;  %v529_v15 = vunpack.c.l.bf16 %v1787_v31  ;;  %v530_v11 = vunpack.c.l.bf16 %v1790_v17  ;;  %v531_v59 = vunpack.c.l.bf16 %v1799_v54 }
  0x59   : > { %v532_v22 = vunpack.c.l.bf16 %v1802_v14  ;;  %v533_v38 = vunpack.c.l.bf16 %v1805_v46  ;;  %v534_v60 = vunpack.c.l.bf16 %v1820_v34  ;;  %v535_v52 = vunpack.c.l.bf16 %v1823_v57 }
  0x5a   : > { %v536_v12 = vrot.slane %v528_v10, 4  ;;  %v542_v61 = vrot.slane %v529_v15, 4  ;;  %v548_v16 = vrot.slane %v530_v11, 4  ;;  %v554_v41 = vrot.slane %v531_v59, 4 }
  0x5b   : > { %v560_v62 = vrot.slane %v532_v22, 4  ;;  %v566_v42 = vrot.slane %v533_v38, 4  ;;  %v572_v0 = vrot.slane %v534_v60, 4  ;;  %v578_v25 = vrot.slane %v535_v52, 4 }
  0x5c   : > { %v537_v63 = vadd.f32 %v536_v12, %v528_v10  ;;  %v543_v43 = vadd.f32 %v542_v61, %v529_v15  ;;  %v549_v1 = vadd.f32 %v548_v16, %v530_v11  ;;  %v555_v23 = vadd.f32 %v554_v41, %v531_v59 }
  0x5d   : > { %v561_v2 = vadd.f32 %v560_v62, %v532_v22  ;;  %v567_v3 = vadd.f32 %v566_v42, %v533_v38  ;;  %v573_v6 = vadd.f32 %v572_v0, %v534_v60  ;;  %v579_v7 = vadd.f32 %v578_v25, %v535_v52 }
  0x5e   : > { %v538_v4 = vrot.slane %v537_v63, 2  ;;  %v544_v5 = vrot.slane %v543_v43, 2  ;;  %v550_v8 = vrot.slane %v549_v1, 2  ;;  %v556_v9 = vrot.slane %v555_v23, 2 }
  0x5f   : > { %v562_v19 = vrot.slane %v561_v2, 2  ;;  %v568_v20 = vrot.slane %v567_v3, 2  ;;  %v574_v32 = vrot.slane %v573_v6, 2  ;;  %v580_v33 = vrot.slane %v579_v7, 2 }
  0x60   : > { %v539_v21 = vadd.f32 %v538_v4, %v537_v63  ;;  %v545_v24 = vadd.f32 %v544_v5, %v543_v43  ;;  %v551_v35 = vadd.f32 %v550_v8, %v549_v1  ;;  %v557_v36 = vadd.f32 %v556_v9, %v555_v23 }
  0x61   : > { %v563_v37 = vadd.f32 %v562_v19, %v561_v2  ;;  %v569_v39 = vadd.f32 %v568_v20, %v567_v3  ;;  %v575_v27 = vadd.f32 %v574_v32, %v573_v6  ;;  %v581_v47 = vadd.f32 %v580_v33, %v579_v7 }
  0x62   : > { %v540_v40 = vrot.slane %v539_v21, 1  ;;  %v546_v13 = vrot.slane %v545_v24, 1  ;;  %v552_v29 = vrot.slane %v551_v35, 1  ;;  %v558_v30 = vrot.slane %v557_v36, 1 }
  0x63   : > { %v564_v48 = vrot.slane %v563_v37, 1  ;;  %v570_v49 = vrot.slane %v569_v39, 1  ;;  %v576_v10 = vrot.slane %v575_v27, 1  ;;  %v582_v15 = vrot.slane %v581_v47, 1 }
  0x64   : > { %v541_v44 = vadd.f32 %v540_v40, %v539_v21  ;;  %v547_v53 = vadd.f32 %v546_v13, %v545_v24  ;;  %v553_v11 = vadd.f32 %v552_v29, %v551_v35  ;;  %v559_v59 = vadd.f32 %v558_v30, %v557_v36 }
  0x65   : > { %v565_v22 = vadd.f32 %v564_v48, %v563_v37  ;;  %v571_v38 = vadd.f32 %v570_v49, %v569_v39  ;;  %v577_v60 = vadd.f32 %v576_v10, %v575_v27  ;;  %v583_v52 = vadd.f32 %v582_v15, %v581_v47 }
  0x66   : > { %v1840_v12 = vadd.f32 %v541_v44, %v1793_v18  ;;  %v1843_v61 = vadd.f32 %v547_v53, %v1796_v45  ;;  %v1846_v16 = vadd.f32 %v553_v11, %v1808_v55  ;;  %v1849_v41 = vadd.f32 %v559_v59, %v1811_v56 }
  0x67   : > { %v1852_v62 = vadd.f32 %v565_v22, %v1814_v26  ;;  %v1855_v42 = vadd.f32 %v571_v38, %v1817_v51  ;;  %v1858_v63 = vadd.f32 %v577_v60, %v1826_v58  ;;  %v1861_v18 = vadd.f32 %v583_v52, %v1829_v28  ;;  %v665_v60 = vld [vmem:[%s1563_s8 + $0x18] sm:$0x1]  ;;  %v666_v52 = vld [vmem:[%s1563_s8 + $0x34] sm:$0x1] }
  0x68   : > { %v601_v45 = vunpack.c.h.bf16 %v1784_v50  ;;  %v602_v55 = vunpack.c.h.bf16 %v1787_v31  ;;  %v603_v43 = vunpack.c.h.bf16 %v1790_v17  ;;  %v604_v56 = vunpack.c.h.bf16 %v1799_v54 }
  0x69   : > { %v605_v26 = vunpack.c.h.bf16 %v1802_v14  ;;  %v606_v0 = vunpack.c.h.bf16 %v1805_v46  ;;  %v607_v51 = vunpack.c.h.bf16 %v1820_v34  ;;  %v608_v58 = vunpack.c.h.bf16 %v1823_v57 }
  0x6a   : > { %v609_v25 = vrot.slane %v601_v45, 4  ;;  %v615_v1 = vrot.slane %v602_v55, 4  ;;  %v621_v28 = vrot.slane %v603_v43, 4  ;;  %v627_v23 = vrot.slane %v604_v56, 4 }
  0x6b   : > { %v633_v2 = vrot.slane %v605_v26, 4  ;;  %v639_v50 = vrot.slane %v606_v0, 4  ;;  %v645_v4 = vrot.slane %v607_v51, 4  ;;  %v651_v17 = vrot.slane %v608_v58, 4 }
  0x6c   : > { %v610_v3 = vadd.f32 %v609_v25, %v601_v45  ;;  %v616_v31 = vadd.f32 %v615_v1, %v602_v55  ;;  %v622_v5 = vadd.f32 %v621_v28, %v603_v43  ;;  %v628_v54 = vadd.f32 %v627_v23, %v604_v56  ;;  %v667_v45 = vld [vmem:[%s1563_s8 + $0x50] sm:$0x1] }
  0x6d   : > { %v634_v6 = vadd.f32 %v633_v2, %v605_v26  ;;  %v640_v14 = vadd.f32 %v639_v50, %v606_v0  ;;  %v646_v8 = vadd.f32 %v645_v4, %v607_v51  ;;  %v652_v34 = vadd.f32 %v651_v17, %v608_v58  ;;  %v668_v0 = vld [vmem:[%s1563_s8 + $0x6c] sm:$0x1]  ;;  %v669_v51 = vld [vmem:[%s1563_s8 + $0x88] sm:$0x1]  ;;  %v670_v58 = vld [vmem:[%s1563_s8 + $0xa4] sm:$0x1] }
  0x6e   : > { %v611_v7 = vrot.slane %v610_v3, 2  ;;  %v617_v46 = vrot.slane %v616_v31, 2  ;;  %v623_v9 = vrot.slane %v622_v5, 2  ;;  %v629_v57 = vrot.slane %v628_v54, 2  ;;  %v671_v2 = vld [vmem:[%s1563_s8 + $0xc0] sm:$0x1] }
  0x6f   : > { %v635_v19 = vrot.slane %v634_v6, 2  ;;  %v641_v20 = vrot.slane %v640_v14, 2  ;;  %v647_v32 = vrot.slane %v646_v8, 2  ;;  %v653_v33 = vrot.slane %v652_v34, 2  ;;  %v672_v50 = vld [vmem:[%s1563_s8 + $0xdc] sm:$0x1] }
  0x70   : > { %v612_v21 = vadd.f32 %v611_v7, %v610_v3  ;;  %v618_v24 = vadd.f32 %v617_v46, %v616_v31  ;;  %v624_v35 = vadd.f32 %v623_v9, %v622_v5  ;;  %v630_v36 = vadd.f32 %v629_v57, %v628_v54 }
  0x71   : > { %v636_v37 = vadd.f32 %v635_v19, %v634_v6  ;;  %v642_v39 = vadd.f32 %v641_v20, %v640_v14  ;;  %v648_v27 = vadd.f32 %v647_v32, %v646_v8  ;;  %v654_v47 = vadd.f32 %v653_v33, %v652_v34 }
  0x72   : > { %v613_v40 = vrot.slane %v612_v21, 1  ;;  %v619_v13 = vrot.slane %v618_v24, 1  ;;  %v625_v29 = vrot.slane %v624_v35, 1  ;;  %v631_v30 = vrot.slane %v630_v36, 1 }
  0x73   : > { %v637_v48 = vrot.slane %v636_v37, 1  ;;  %v643_v49 = vrot.slane %v642_v39, 1  ;;  %v649_v10 = vrot.slane %v648_v27, 1  ;;  %v655_v15 = vrot.slane %v654_v47, 1 }
  0x74   : > { %v614_v44 = vadd.f32 %v613_v40, %v612_v21  ;;  %v620_v53 = vadd.f32 %v619_v13, %v618_v24  ;;  %v626_v11 = vadd.f32 %v625_v29, %v624_v35  ;;  %v632_v59 = vadd.f32 %v631_v30, %v630_v36 }
  0x75   : > { %v638_v22 = vadd.f32 %v637_v48, %v636_v37  ;;  %v644_v38 = vadd.f32 %v643_v49, %v642_v39  ;;  %v650_v55 = vadd.f32 %v649_v10, %v648_v27  ;;  %v656_v43 = vadd.f32 %v655_v15, %v654_v47  ;;  %v1205_v10 = vld [vmem:[%s1952_s3 + $0x38] sm:$0xff]  }
  0x76   : > { %v657_v56 = vadd.f32 %v614_v44, %v1840_v12  ;;  %v658_v26 = vadd.f32 %v620_v53, %v1843_v61  ;;  %v659_v25 = vadd.f32 %v626_v11, %v1846_v16  ;;  %v660_v1 = vadd.f32 %v632_v59, %v1849_v41  ;;  %v1204_v44 = vld [vmem:[%s1952_s3 + $0x30] sm:$0xff]   ;;  %v1213_v53 = vld [vmem:[%s1952_s3 + $0x78] sm:$0xff]  }
  0x77   : > { %v661_v28 = vadd.f32 %v638_v22, %v1852_v62  ;;  %v662_v23 = vadd.f32 %v644_v38, %v1855_v42  ;;  %v663_v3 = vadd.f32 %v650_v55, %v1858_v63  ;;  %v664_v31 = vadd.f32 %v656_v43, %v1861_v18  ;;  %1308 = vmatpush3.bf16.msra.mxu1 %v1204_v44  ;;  %v753_v22 = vld [vmem:[%s1951_s2] sm:$0x3] }
  0x78   : > { %v673_v12 = vunpack.c.l.bf16 %v665_v60  ;;  %v674_v4 = vunpack.c.l.bf16 %v666_v52  ;;  %v675_v61 = vunpack.c.l.bf16 %v667_v45  ;;  %v676_v17 = vunpack.c.l.bf16 %v668_v0  ;;  %1310 = vmatprep.subr.bf16.mxu1 %v1213_v53 }
  0x79   : > { %v677_v5 = vunpack.c.l.bf16 %v669_v51  ;;  %v678_v54 = vunpack.c.l.bf16 %v670_v58  ;;  %v679_v6 = vunpack.c.l.bf16 %v671_v2  ;;  %v680_v16 = vunpack.c.l.bf16 %v672_v50  ;;  %v1130_v58 = vld [vmem:[%s1953_s4] ss:$0 sm:$0xff] }
  0x7a   : > { %v689_v14 = vadd.f32 %v673_v12, %v657_v56  ;;  %v690_v41 = vadd.f32 %v674_v4, %v658_v26  ;;  %v691_v7 = vadd.f32 %v675_v61, %v659_v25  ;;  %v692_v62 = vadd.f32 %v676_v17, %v660_v1 }
  0x7b   : > { %v693_v46 = vadd.f32 %v677_v5, %v661_v28  ;;  %v694_v42 = vadd.f32 %v678_v54, %v662_v23  ;;  %v695_v8 = vadd.f32 %v679_v6, %v663_v3  ;;  %v696_v34 = vadd.f32 %v680_v16, %v664_v31  ;;  %1312 = vmatpush3.bf16.msra.mxu1 %v1205_v10 }
  0x7c   : > { %v697_v9 = vmul.f32 0.020408163, %v689_v14  ;;  %v698_v63 = vmul.f32 0.020408163, %v690_v41  ;;  %v699_v57 = vmul.f32 0.020408163, %v691_v7  ;;  %v755_v15 = vlaneseq }
  0x7d   : > { %v700_v18 = vmul.f32 0.020408163, %v692_v62  ;;  %v701_v19 = vmul.f32 0.020408163, %v693_v46  ;;  %v702_v20 = vmul.f32 0.020408163, %v694_v42 }
  0x7e   : > { %v703_v21 = vmul.f32 0.020408163, %v695_v8  ;;  %v704_v24 = vmul.f32 0.020408163, %v696_v34  ;;  %v773_v32 = vrot.slane %v698_v63, 7  ;;  %v776_v33 = vrot.slane %v699_v57, 6 }
  0x7f   : > { %v779_v35 = vrot.slane %v700_v18, 5  ;;  %v782_v36 = vrot.slane %v701_v19, 4  ;;  %v785_v39 = vrot.slane %v702_v20, 3  ;;  %v756_v11 = vshrl.u32 %v755_v15, 7 }
  0x80   : > { %v775_v37 = vsel %vm774_vm0, %v773_v32, %v697_v9  ;;  %v788_v13 = vrot.slane %v703_v21, 2  ;;  %v791_v47 = vrot.slane %v704_v24, 1 }
  0x81   : > { %v778_v40 = vsel %vm777_vm1, %v776_v33, %v775_v37  ;;  %v757_v59 = vsub.s32 0, %v756_v11  ;;  %v761_v38 = vsub.s32 1, %v756_v11 }
  0x82   : > { %v781_v27 = vsel %vm780_vm2, %v779_v35, %v778_v40 }
  0x83   : > { %v784_v29 = vsel %vm783_vm3, %v782_v36, %v781_v27  ;;  %v758_v60 = vrot.slane %v753_v22, %v757_v59  ;;  %v762_v52 = vrot.slane %v753_v22, %v761_v38 }
  0x84   : > { %v787_v30 = vsel %vm786_vm4, %v785_v39, %v784_v29 }
  0x85   : > { %v790_v48 = vsel %vm789_vm5, %v788_v13, %v787_v30 }
  0x86   : > { %v793_v49 = vsel %vm792_vm6, %v791_v47, %v790_v48 }
  0x87   : > { %860 = vmatmul.mubr.f32.vlgmr.msra.gmra.mrb[0].mxu0 %v793_v49 }
 0x15a   : > { %v861_v45 = vpop.f32.mrb[0].mxu0 }
 0x15b   : > { %v862_v55 = vadd.f32 %v861_v45, %v758_v60  ;;  %v863_v43 = vpop.f32.mrb[1].mxu0 }
 0x15c   : > { %v864_v56 = vadd.f32 %v863_v43, %v762_v52 }
 0x15d   : > { %v866_v0 = vmax.f32 %v862_v55, 0.0 }
 0x15e   : > { %v867_v26 = vmax.f32 %v864_v56, 0.0 }
 0x160   : > { %1003 = vmatprep.mubr.f32.mxu1 %v867_v26 }
 0x161   : > { %1004 = vmatmul.mubr.f32.vlgmr.msra.gmra.mrb[0].mxu1 %v866_v0 }
 0x234   : > { %v1246_v51 = vpop.f32.mrb[0].mxu1 }
 0x235   : > { %v1247_v25 = vpop.f32.mrb[1].mxu1 }
 0x236   : > { %v1248_v1 = vadd.f32 %v1247_v25, %v1246_v51 }
 0x238   : > { %v1006_v28 = vadd.f32 %v1248_v1, %v1130_v58 }
 0x23a   : > { %1009 = vst [vmem:[%s220_s25] sm:$0xff] %v1006_v28 }
 0x23b   : > { %1407 = shalt.err (!%p1404_p3)
}
 0x23c   : > { %s1408_s12 = scalar_lea.hbm %s1907_s6, 128  ;;  %s1412_s15 = scalar_lea.hbm %s1954_s5, 256 }
 0x23d   : > { %p1409_p4 = scmp.ne.s32.totalorder %s1907_s6, %s1408_s12  ;;  %p1413_p9 = scmp.lt.u32.totalorder %s1907_s6, %s1954_s5 }
 0x23e   : > { %p1414_p10 = scmp.lt.u32.totalorder %s1412_s15, %s1408_s12  ;;  %p1416_p12 = scmp.lt.u32.totalorder %s1408_s12, %s1907_s6 }
 0x23f   : > { %p1410_p7 = pnand %p1409_p4, %p1528_p5 }
 0x240   : > { %p1415_p11 = por %p1414_p10, %p1413_p9 }
 0x241   : > { %p1411_p8 = pneg %p1410_p7 }
 0x242   : > { %p1417_p13 = por %p1416_p12, %p1415_p11 }
 0x244   : > { %p1418_p0 = pnand %p1417_p13, %p1411_p8 }
 0x246   : > { %1421 = shalt.err (!%p1418_p0)
}
 0x247   : > { %1330 = dma.vmem_to_hbm [thread:$0]  (%p1528_p5), %s1909_s26, 128, %s1907_s6, %s1011_s9  }
 0x248 PF: > { %p1336_p1 = scmp.ge.s32.totalorder %s1456_s21, 2  ;;  %s1036_s23 = sand.u32 1, %s1444_s18  }
 0x249   : > { %s1037_s25 = scalar_lea.sflag [#allocation3], %s1036_s23 }
 0x24a   : > { %p1333_p2 = pnand %p1336_p1, %p1532_p6 }
 0x24c   : > { %1439 = dma.done.wait (!%p1333_p2), %s1037_s25, 128  }
 0x24d   : > { %1441 = vsyncadd (!%p1333_p2), %s1037_s25, 4294967168  ;;  %p15_p3 = scmp.ge.s32.totalorder %s1515_s24, 4   ;;  %s1957_s18 = smov %s1448_s19 }
 0x24e   : > { %s1958_s19 = smov %s1452_s20  ;;  %s1959_s20 = smov %s1526_s27 }
 0x24f   : > { %s1960_s21 = smov %s1515_s24  ;;  %17 = sbr.rel (!%p15_p3) target bundleno = 3 (0x3), region = 80 }
 0x256   :  { %1042 = vsyncpa [#allocation3], 1 }
 0x257   :  { %1044 = vsyncpa [#allocation3 + $0x1], 1 }

// kernel: tpu_custom_call.1
= control target key start
LH: loop header
LB: loop body
LE: loop exit
PB: predicated region body
PF: predicated region fallthrough
CT: control target
= control target key end

     0   :  { %10 = vsyncpa [#allocation3], 0  ;;  %s1949_s0 = inlined_call_operand.vmem [shape: bf16[16,49,128], index: 0, kind: input, shape index: {}]   ;;  %s1950_s1 = inlined_call_operand.vmem [shape: bf16[128,256], index: 1, kind: input, shape index: {}]   ;;  %s1951_s2 = inlined_call_operand.vmem [shape: f32[1,256], index: 2, kind: input, shape index: {}]   ;;  %s1952_s3 = inlined_call_operand.vmem [shape: bf16[256,128], index: 3, kind: input, shape index: {}]   ;;  %s1953_s4 = inlined_call_operand.vmem [shape: f32[1,128], index: 4, kind: input, shape index: {}]   ;;  %s1954_s5 = inlined_call_operand.hbm [shape: f32[16,128], index: 5, kind: output, shape index: {}]  }
   0x1   :  { %12 = vsyncpa [#allocation3 + $0x1], 0  ;;  %s1490_s18 = smov 0   ;;  %s1492_s19 = smov 0  }
   0x2   :  { %s1494_s20 = smov 0   ;;  %s1496_s21 = smov 0  }
   0x3 LB: > { %s1511_s22 = sadd.s32 4294967295, %s1456_s21   ;;  %s1083_s23 = sadd.s32 4294967294, %s1456_s21   ;;  %s1456_s21 = sphi %s1496_s21, %s1960_s21   ;;  %s1452_s20 = sphi %s1494_s20, %s1959_s20   ;;  %s1448_s19 = sphi %s1492_s19, %s1958_s19   ;;  %s1444_s18 = sphi %s1490_s18, %s1957_s18  }
   0x4   : > { %s1515_s24 = sadd.s32 1, %s1456_s21   ;;  %s135_s25 = sadd.s32 1, %s1452_s20 }
   0x5   : > { %s132_s26 = ssub.s32 %s1456_s21, %s1515_s24  ;;  %p145_p0 = scmp.ne.s32.totalorder %s1452_s20, %s1448_s19 }
   0x6   : > { %p133_p1 = scmp.eq.s32.totalorder %s132_s26, 0  ;;  %p146_p2 = scmp.eq.s32.totalorder %s1511_s22, 1 }
   0x7   : > { %p151_p3 = scmp.ne.s32.totalorder %s1448_s19, %s1444_s18  ;;  %p152_p4 = scmp.eq.s32.totalorder %s1083_s23, 1 }
   0x8   : > { %s1526_s27 = scalar_select %p133_p1, %s1452_s20, %s135_s25  }
   0x9   : > { %p1528_p5 = por %p146_p2, %p145_p0  ;;  %p1532_p6 = por %p152_p4, %p151_p3 }
   0xa   : > { %p1086_p7 = scmp.ge.s32.totalorder %s1456_s21, 1  ;;  %p192_p8 = scmp.lt.s32.totalorder %s1456_s21, 3 }
   0xc   : > { %p193_p9 = pnand %p1086_p7, %p192_p8 }
   0xd   : > { %v1370_v0 = vld [vmem:[%s1950_s1 + $0x4] ss:$8 sps:$4 sm:$0xff] (!%p193_p9)   ;;  %s1088_s7 = sshll.u32 (!%p193_p9), %s1511_s22, 3  ;;  %v1372_v1 = vld [vmem:[%s1950_s1] ss:$8 sps:$4 sm:$0xff] (!%p193_p9)   ;;  %v1458_v2 = vmov (!%p193_p9), 0.0  }
   0xe   : > { %196 = sbr.rel (%p193_p9) target bundleno = 584 (0x248), region = 40  ;;  %859 = vmatprep.mubr.f32.mxu0 (!%p193_p9), %v1458_v2  ;;  %p222_p10 = scmp.lt.s32.totalorder (!%p193_p9), %s1088_s7, 15  ;;  %1250 = vmatprep.subr.bf16.mxu0 (!%p193_p9), %v1370_v0  ;;  %v1373_v3 = vld [vmem:[%s1950_s1 + $0x14] ss:$8 sps:$4 sm:$0xff] (!%p193_p9)   ;;  %v1375_v4 = vld [vmem:[%s1950_s1 + $0x10] ss:$8 sps:$4 sm:$0xff] (!%p193_p9)  }
   0xf   : > { %1252 = vmatpush1.bf16.msra.mxu0 (!%p193_p9), %v1372_v1  ;;  %v1376_v5 = vld [vmem:[%s1950_s1 + $0x24] ss:$8 sps:$4 sm:$0xff] (!%p193_p9)   ;;  %v1378_v6 = vld [vmem:[%s1950_s1 + $0x20] ss:$8 sps:$4 sm:$0xff] (!%p193_p9)   ;;  %v1379_v7 = vld [vmem:[%s1950_s1 + $0x34] ss:$8 sps:$4 sm:$0xff] (!%p193_p9)  }
  0x10   : > { %1254 = vmatprep.subr.bf16.mxu0 (!%p193_p9), %v1373_v3  ;;  %v1381_v8 = vld [vmem:[%s1950_s1 + $0x30] ss:$8 sps:$4 sm:$0xff] (!%p193_p9)   ;;  %v1382_v9 = vld [vmem:[%s1950_s1 + $0x44] ss:$8 sps:$4 sm:$0xff] (!%p193_p9)   ;;  %v1384_v32 = vld [vmem:[%s1950_s1 + $0x40] ss:$8 sps:$4 sm:$0xff] (!%p193_p9)  }
  0x11   : > { %v1385_v37 = vld [vmem:[%s1950_s1 + $0x54] ss:$8 sps:$4 sm:$0xff] (!%p193_p9)   ;;  %v1206_v50 = vld [vmem:[%s1952_s3 + $0x40] sm:$0xff] (!%p193_p9)   ;;  %v1387_v51 = vld [vmem:[%s1950_s1 + $0x50] ss:$8 sps:$4 sm:$0xff] (!%p193_p9)   ;;  %vm774_vm0 = vcmask (!%p193_p9), 1041409  }
  0x12   : > { %1282 = vmatprep.subr.bf16.mxu1 (!%p193_p9), %v1206_v50  ;;  %v1136_v56 = vld [vmem:[%s1952_s3] sm:$0xff] (!%p193_p9)   ;;  %v1207_v62 = vld [vmem:[%s1952_s3 + $0x48] sm:$0xff] (!%p193_p9)   ;;  %vm777_vm1 = vcmask (!%p193_p9), 1042434   ;;  %vm780_vm2 = vcmask (!%p193_p9), 1043459   ;;  %vm783_vm3 = vcmask (!%p193_p9), 1044484   ;;  %vm786_vm4 = vcmask (!%p193_p9), 1045509  }
  0x13   : > { %1256 = vmatpush1.bf16.msra.mxu0 (!%p193_p9), %v1375_v4  ;;  %v1388_v57 = vld [vmem:[%s1950_s1 + $0x64] ss:$8 sps:$4 sm:$0xff] (!%p193_p9)   ;;  %1284 = vmatpush3.bf16.msra.mxu1 (!%p193_p9), %v1136_v56  ;;  %vm789_vm5 = vcmask (!%p193_p9), 1046534   ;;  %vm792_vm6 = vcmask (!%p193_p9), 1047559   ;;  %s218_s14 = sand.u32 (!%p193_p9), 1, %s1448_s19   ;;  %s1132_s23 = sshll.u32 (!%p193_p9), %s1511_s22, 7 }
  0x14   : > { %1258 = vmatprep.subr.bf16.mxu0 (!%p193_p9), %v1376_v5  ;;  %1286 = vmatprep.subr.bf16.mxu1 (!%p193_p9), %v1207_v62  ;;  %v1199_v3 = vld [vmem:[%s1952_s3 + $0x8] sm:$0xff] (!%p193_p9)   ;;  %s1087_s15 = sshll.u32 (!%p193_p9), %s218_s14, 3  ;;  %s1907_s6 = scalar_lea.hbm (!%p193_p9), %s1954_s5, %s1132_s23 }
  0x15   : > { %s1962_s7 = smov (!%p222_p10, %s1088_s7), 15  ;;  %s220_s25 = scalar_lea.vmem [#allocation2], %s1087_s15 }
  0x16   : > { %s1329_s16 = smul.u32 28, %s1962_s7  ;;  %s1024_s26 = sshll.u32 %s220_s25, 4  ;;  %s1909_s26 = int_to_ptr.vmem [resolvable:$true] %s1024_s26 }
  0x17   : > { %1260 = vmatpush1.bf16.msra.mxu0 %v1378_v6  ;;  %1288 = vmatpush3.bf16.msra.mxu1 %v1199_v3  ;;  %s1011_s9 = scalar_lea.sflag [#allocation3], %s218_s14  ;;  %s1394_s10 = scalar_lea.vmem %s1909_s26, 128 }
  0x18   : > { %s1563_s8 = scalar_lea.vmem %s1949_s0, %s1329_s16  ;;  %1262 = vmatprep.subr.bf16.mxu0 %v1379_v7  ;;  %p1395_p11 = scmp.ne.s32.totalorder %s1909_s26, %s1394_s10 }
  0x19   : > { %v1572_v10 = vld [vmem:[%s1563_s8] sm:$0xff]   ;;  %v1578_v12 = vld [vmem:[%s1563_s8 + $0x38] sm:$0xff]   ;;  %v1586_v16 = vld [vmem:[%s1563_s8 + $0x70] sm:$0xff]   ;;  %s1459_s22 = smov [#allocation2]  }
  0x1a   : > { %v1575_v11 = vld [vmem:[%s1563_s8 + $0x1c] sm:$0xff]   ;;  %v1581_v13 = vld [vmem:[%s1563_s8 + $0x54] sm:$0xff]   ;;  %v236_v14 = vunpack.c.l.bf16 %v1572_v10  ;;  %v309_v15 = vunpack.c.h.bf16 %v1572_v10  ;;  %v1589_v17 = vld [vmem:[%s1563_s8 + $0x8c] sm:$0xff]   ;;  %v238_v20 = vunpack.c.l.bf16 %v1578_v12  ;;  %v240_v24 = vunpack.c.l.bf16 %v1586_v16  ;;  %p1396_p12 = pnand %p1395_p11, %p1528_p5  ;;  %s1398_s7 = sshll.u32 %s1459_s22, 4  ;;  %s1399_s7 = int_to_ptr.vmem [resolvable:$false] %s1398_s7 }
  0x1b   : > { %v1592_v18 = vld [vmem:[%s1563_s8 + $0xa8] sm:$0xff]   ;;  %v237_v19 = vunpack.c.l.bf16 %v1575_v11  ;;  %v239_v21 = vunpack.c.l.bf16 %v1581_v13  ;;  %v310_v22 = vunpack.c.h.bf16 %v1575_v11  ;;  %v241_v25 = vunpack.c.l.bf16 %v1589_v17  ;;  %1264 = vmatpush1.bf16.msra.mxu0 %v1381_v8  ;;  %v1208_v8 = vld [vmem:[%s1952_s3 + $0x50] sm:$0xff]   ;;  %s1400_s11 = scalar_lea.vmem %s1399_s7, 256  ;;  %p1401_p0 = scmp.lt.s32.totalorder %s1909_s26, %s1399_s7 }
  0x1c   : > { %v1599_v23 = vld [vmem:[%s1563_s8 + $0xc4] sm:$0xff]   ;;  %v242_v26 = vunpack.c.l.bf16 %v1592_v18  ;;  %v244_v27 = vrot.slane %v236_v14, 4  ;;  %v256_v30 = vrot.slane %v238_v20, 4  ;;  %v268_v34 = vrot.slane %v240_v24, 4  ;;  %1266 = vmatprep.subr.bf16.mxu0 %v1382_v9  ;;  %1290 = vmatprep.subr.bf16.mxu1 %v1208_v8  ;;  %p1397_p13 = pneg %p1396_p12  ;;  %p1402_p1 = scmp.lt.s32.totalorder %s1400_s11, %s1394_s10 }
  0x1d   : > { %v243_v28 = vunpack.c.l.bf16 %v1599_v23  ;;  %v250_v29 = vrot.slane %v237_v19, 4  ;;  %v262_v31 = vrot.slane %v239_v21, 4  ;;  %v274_v35 = vrot.slane %v241_v25, 4  ;;  %v1390_v9 = vld [vmem:[%s1950_s1 + $0x60] ss:$8 sps:$4 sm:$0xff]  }
  0x1e   : > { %v245_v33 = vadd.f32 %v244_v27, %v236_v14  ;;  %v280_v36 = vrot.slane %v242_v26, 4  ;;  %v257_v39 = vadd.f32 %v256_v30, %v238_v20  ;;  %v269_v43 = vadd.f32 %v268_v34, %v240_v24  ;;  %v1391_v24 = vld [vmem:[%s1950_s1 + $0x74] ss:$8 sps:$4 sm:$0xff]   ;;  %p1403_p2 = por %p1402_p1, %p1401_p0 }
  0x1f   : > { %v251_v38 = vadd.f32 %v250_v29, %v237_v19  ;;  %v263_v40 = vadd.f32 %v262_v31, %v239_v21  ;;  %v286_v41 = vrot.slane %v243_v28, 4  ;;  %v275_v44 = vadd.f32 %v274_v35, %v241_v25  ;;  %1268 = vmatpush1.bf16.msra.mxu0 %v1384_v32 }
  0x20   : > { %v246_v42 = vrot.slane %v245_v33, 2  ;;  %v281_v45 = vadd.f32 %v280_v36, %v242_v26  ;;  %v258_v47 = vrot.slane %v257_v39, 2  ;;  %v270_v53 = vrot.slane %v269_v43, 2  ;;  %1270 = vmatprep.subr.bf16.mxu0 %v1385_v37  ;;  %p1404_p3 = pnand %p1403_p2, %p1397_p13 }
  0x21   : > { %v252_v46 = vrot.slane %v251_v38, 2  ;;  %v264_v48 = vrot.slane %v263_v40, 2  ;;  %v287_v49 = vadd.f32 %v286_v41, %v243_v28  ;;  %v276_v54 = vrot.slane %v275_v44, 2 }
  0x22   : > { %v247_v52 = vadd.f32 %v246_v42, %v245_v33  ;;  %v282_v55 = vrot.slane %v281_v45, 2  ;;  %v259_v59 = vadd.f32 %v258_v47, %v257_v39  ;;  %v271_v0 = vadd.f32 %v270_v53, %v269_v43  ;;  %v1200_v33 = vld [vmem:[%s1952_s3 + $0x10] sm:$0xff]  }
  0x23   : > { %v253_v58 = vadd.f32 %v252_v46, %v251_v38  ;;  %v265_v60 = vadd.f32 %v264_v48, %v263_v40  ;;  %v288_v61 = vrot.slane %v287_v49, 2  ;;  %v277_v1 = vadd.f32 %v276_v54, %v275_v44  ;;  %1272 = vmatpush1.bf16.msra.mxu0 %v1387_v51  ;;  %v1209_v38 = vld [vmem:[%s1952_s3 + $0x58] sm:$0xff]   ;;  %1292 = vmatpush3.bf16.msra.mxu1 %v1200_v33  ;;  %v1210_v51 = vld [vmem:[%s1952_s3 + $0x60] sm:$0xff]  }
  0x24   : > { %v248_v63 = vrot.slane %v247_v52, 1  ;;  %v283_v2 = vadd.f32 %v282_v55, %v281_v45  ;;  %v260_v5 = vrot.slane %v259_v59, 1  ;;  %v272_v19 = vrot.slane %v271_v0, 1  ;;  %1274 = vmatprep.subr.bf16.mxu0 %v1388_v57  ;;  %1294 = vmatprep.subr.bf16.mxu1 %v1209_v38  ;;  %v1201_v46 = vld [vmem:[%s1952_s3 + $0x18] sm:$0xff]   ;;  %v1696_v38 = vld [vmem:[%s1563_s8 + $0x24] sm:$0xff]  }
  0x25   : > { %v254_v4 = vrot.slane %v253_v58, 1  ;;  %v266_v6 = vrot.slane %v265_v60, 1  ;;  %v289_v7 = vadd.f32 %v288_v61, %v287_v49  ;;  %v278_v20 = vrot.slane %v277_v1, 1 }
  0x26   : > { %v1635_v14 = vadd.f32 %v248_v63, %v247_v52  ;;  %v284_v21 = vrot.slane %v283_v2, 1  ;;  %v1642_v26 = vadd.f32 %v260_v5, %v259_v59  ;;  %v1646_v29 = vadd.f32 %v272_v19, %v271_v0 }
  0x27   : > { %v1640_v25 = vadd.f32 %v254_v4, %v253_v58  ;;  %v1644_v27 = vadd.f32 %v266_v6, %v265_v60  ;;  %v290_v28 = vrot.slane %v289_v7, 1  ;;  %v1648_v30 = vadd.f32 %v278_v20, %v277_v1  ;;  %1276 = vmatpush1.bf16.msra.mxu0 %v1390_v9  ;;  %1296 = vmatpush3.bf16.msra.mxu1 %v1201_v46  ;;  %v1202_v60 = vld [vmem:[%s1952_s3 + $0x20] sm:$0xff]   ;;  %v1211_v1 = vld [vmem:[%s1952_s3 + $0x68] sm:$0xff]  }
  0x28   : > { %v1650_v31 = vadd.f32 %v284_v21, %v283_v2  ;;  %v311_v32 = vunpack.c.h.bf16 %v1578_v12  ;;  %v312_v35 = vunpack.c.h.bf16 %v1581_v13  ;;  %v313_v36 = vunpack.c.h.bf16 %v1586_v16  ;;  %v1393_v12 = vld [vmem:[%s1950_s1 + $0x70] ss:$8 sps:$4 sm:$0xff]   ;;  %1278 = vmatprep.subr.bf16.mxu0 %v1391_v24  ;;  %1298 = vmatprep.subr.bf16.mxu1 %v1210_v51 }
  0x29   : > { %v1656_v34 = vadd.f32 %v290_v28, %v289_v7  ;;  %v314_v37 = vunpack.c.h.bf16 %v1589_v17  ;;  %v315_v39 = vunpack.c.h.bf16 %v1592_v18  ;;  %v316_v40 = vunpack.c.h.bf16 %v1599_v23  ;;  %v1690_v28 = vld [vmem:[%s1563_s8 + $0x8] sm:$0xff]  }
  0x2a   : > { %v317_v13 = vrot.slane %v309_v15, 4  ;;  %v323_v16 = vrot.slane %v310_v22, 4  ;;  %v329_v17 = vrot.slane %v311_v32, 4  ;;  %v335_v41 = vrot.slane %v312_v35, 4 }
  0x2b   : > { %v341_v42 = vrot.slane %v313_v36, 4  ;;  %v347_v43 = vrot.slane %v314_v37, 4  ;;  %v353_v45 = vrot.slane %v315_v39, 4  ;;  %v359_v23 = vrot.slane %v316_v40, 4  ;;  %1280 = vmatpush1.bf16.msra.mxu0 %v1393_v12  ;;  %1300 = vmatpush3.bf16.msra.mxu1 %v1202_v60  ;;  %v1699_v12 = vld [vmem:[%s1563_s8 + $0x40] sm:$0xff]  }
  0x2c   : > { %v318_v44 = vadd.f32 %v317_v13, %v309_v15  ;;  %v324_v18 = vadd.f32 %v323_v16, %v310_v22  ;;  %v330_v47 = vadd.f32 %v329_v17, %v311_v32  ;;  %v336_v48 = vadd.f32 %v335_v41, %v312_v35  ;;  %1302 = vmatprep.subr.bf16.mxu1 %v1211_v1  ;;  %v1203_v32 = vld [vmem:[%s1952_s3 + $0x28] sm:$0xff]   ;;  %v1711_v41 = vld [vmem:[%s1563_s8 + $0x5c] sm:$0xff]  }
  0x2d   : > { %v342_v49 = vadd.f32 %v341_v42, %v313_v36  ;;  %v348_v50 = vadd.f32 %v347_v43, %v314_v37  ;;  %v354_v11 = vadd.f32 %v353_v45, %v315_v39  ;;  %v360_v22 = vadd.f32 %v359_v23, %v316_v40  ;;  %v1212_v39 = vld [vmem:[%s1952_s3 + $0x70] sm:$0xff]   ;;  %v1714_v42 = vld [vmem:[%s1563_s8 + $0x78] sm:$0xff]  }
  0x2e   : > { %v319_v10 = vrot.slane %v318_v44, 2  ;;  %v325_v15 = vrot.slane %v324_v18, 2  ;;  %v331_v52 = vrot.slane %v330_v47, 2  ;;  %v337_v53 = vrot.slane %v336_v48, 2  ;;  %v1717_v43 = vld [vmem:[%s1563_s8 + $0x94] sm:$0xff]   ;;  %v1735_v23 = vld [vmem:[%s1563_s8 + $0xcc] sm:$0xff]  }
  0x2f   : > { %v343_v54 = vrot.slane %v342_v49, 2  ;;  %v349_v55 = vrot.slane %v348_v50, 2  ;;  %v355_v58 = vrot.slane %v354_v11, 2  ;;  %v361_v59 = vrot.slane %v360_v22, 2  ;;  %1304 = vmatpush3.bf16.msra.mxu1 %v1203_v32 }
  0x30   : > { %v320_v56 = vadd.f32 %v319_v10, %v318_v44  ;;  %v326_v57 = vadd.f32 %v325_v15, %v324_v18  ;;  %v332_v61 = vadd.f32 %v331_v52, %v330_v47  ;;  %v338_v62 = vadd.f32 %v337_v53, %v336_v48  ;;  %1306 = vmatprep.subr.bf16.mxu1 %v1212_v39 }
  0x31   : > { %v344_v63 = vadd.f32 %v343_v54, %v342_v49  ;;  %v350_v0 = vadd.f32 %v349_v55, %v348_v50  ;;  %v356_v4 = vadd.f32 %v355_v58, %v354_v11  ;;  %v362_v5 = vadd.f32 %v361_v59, %v360_v22 }
  0x32   : > { %v321_v2 = vrot.slane %v320_v56, 1  ;;  %v327_v3 = vrot.slane %v326_v57, 1  ;;  %v333_v6 = vrot.slane %v332_v61, 1  ;;  %v339_v7 = vrot.slane %v338_v62, 1 }
  0x33   : > { %v345_v8 = vrot.slane %v344_v63, 1  ;;  %v351_v9 = vrot.slane %v350_v0, 1  ;;  %v357_v21 = vrot.slane %v356_v4, 1  ;;  %v363_v24 = vrot.slane %v362_v5, 1 }
  0x34   : > { %v322_v19 = vadd.f32 %v321_v2, %v320_v56  ;;  %v328_v20 = vadd.f32 %v327_v3, %v326_v57  ;;  %v334_v33 = vadd.f32 %v333_v6, %v332_v61  ;;  %v340_v35 = vadd.f32 %v339_v7, %v338_v62 }
  0x35   : > { %v346_v36 = vadd.f32 %v345_v8, %v344_v63  ;;  %v352_v37 = vadd.f32 %v351_v9, %v350_v0  ;;  %v358_v40 = vadd.f32 %v357_v21, %v356_v4  ;;  %v364_v13 = vadd.f32 %v363_v24, %v362_v5 }
  0x36   : > { %v1705_v16 = vadd.f32 %v322_v19, %v1635_v14  ;;  %v1708_v17 = vadd.f32 %v328_v20, %v1640_v25  ;;  %v1720_v44 = vadd.f32 %v334_v33, %v1642_v26  ;;  %v1723_v18 = vadd.f32 %v340_v35, %v1644_v27  ;;  %v1732_v25 = vld [vmem:[%s1563_s8 + $0xb0] sm:$0xff]  }
  0x37   : > { %v1726_v45 = vadd.f32 %v346_v36, %v1646_v29  ;;  %v1729_v14 = vadd.f32 %v352_v37, %v1648_v30  ;;  %v1738_v46 = vadd.f32 %v358_v40, %v1650_v31  ;;  %v1741_v26 = vadd.f32 %v364_v13, %v1656_v34 }
  0x38   : > { %v382_v27 = vunpack.c.l.bf16 %v1690_v28  ;;  %v383_v47 = vunpack.c.l.bf16 %v1696_v38  ;;  %v384_v29 = vunpack.c.l.bf16 %v1699_v12  ;;  %v385_v30 = vunpack.c.l.bf16 %v1711_v41 }
  0x39   : > { %v386_v48 = vunpack.c.l.bf16 %v1714_v42  ;;  %v387_v49 = vunpack.c.l.bf16 %v1717_v43  ;;  %v388_v50 = vunpack.c.l.bf16 %v1732_v25  ;;  %v389_v31 = vunpack.c.l.bf16 %v1735_v23 }
  0x3a   : > { %v390_v51 = vrot.slane %v382_v27, 4  ;;  %v396_v34 = vrot.slane %v383_v47, 4  ;;  %v402_v10 = vrot.slane %v384_v29, 4  ;;  %v408_v15 = vrot.slane %v385_v30, 4 }
  0x3b   : > { %v414_v11 = vrot.slane %v386_v48, 4  ;;  %v420_v22 = vrot.slane %v387_v49, 4  ;;  %v426_v54 = vrot.slane %v388_v50, 4  ;;  %v432_v55 = vrot.slane %v389_v31, 4 }
  0x3c   : > { %v391_v52 = vadd.f32 %v390_v51, %v382_v27  ;;  %v397_v53 = vadd.f32 %v396_v34, %v383_v47  ;;  %v403_v56 = vadd.f32 %v402_v10, %v384_v29  ;;  %v409_v57 = vadd.f32 %v408_v15, %v385_v30 }
  0x3d   : > { %v415_v58 = vadd.f32 %v414_v11, %v386_v48  ;;  %v421_v59 = vadd.f32 %v420_v22, %v387_v49  ;;  %v427_v62 = vadd.f32 %v426_v54, %v388_v50  ;;  %v433_v63 = vadd.f32 %v432_v55, %v389_v31 }
  0x3e   : > { %v392_v60 = vrot.slane %v391_v52, 2  ;;  %v398_v61 = vrot.slane %v397_v53, 2  ;;  %v404_v0 = vrot.slane %v403_v56, 2  ;;  %v410_v1 = vrot.slane %v409_v57, 2 }
  0x3f   : > { %v416_v2 = vrot.slane %v415_v58, 2  ;;  %v422_v3 = vrot.slane %v421_v59, 2  ;;  %v428_v6 = vrot.slane %v427_v62, 2  ;;  %v434_v7 = vrot.slane %v433_v63, 2 }
  0x40   : > { %v393_v4 = vadd.f32 %v392_v60, %v391_v52  ;;  %v399_v5 = vadd.f32 %v398_v61, %v397_v53  ;;  %v405_v8 = vadd.f32 %v404_v0, %v403_v56  ;;  %v411_v9 = vadd.f32 %v410_v1, %v409_v57 }
  0x41   : > { %v417_v19 = vadd.f32 %v416_v2, %v415_v58  ;;  %v423_v20 = vadd.f32 %v422_v3, %v421_v59  ;;  %v429_v32 = vadd.f32 %v428_v6, %v427_v62  ;;  %v435_v33 = vadd.f32 %v434_v7, %v433_v63 }
  0x42   : > { %v394_v21 = vrot.slane %v393_v4, 1  ;;  %v400_v24 = vrot.slane %v399_v5, 1  ;;  %v406_v35 = vrot.slane %v405_v8, 1  ;;  %v412_v36 = vrot.slane %v411_v9, 1 }
  0x43   : > { %v418_v37 = vrot.slane %v417_v19, 1  ;;  %v424_v39 = vrot.slane %v423_v20, 1  ;;  %v430_v27 = vrot.slane %v429_v32, 1  ;;  %v436_v47 = vrot.slane %v435_v33, 1 }
  0x44   : > { %v395_v40 = vadd.f32 %v394_v21, %v393_v4  ;;  %v401_v13 = vadd.f32 %v400_v24, %v399_v5  ;;  %v407_v29 = vadd.f32 %v406_v35, %v405_v8  ;;  %v413_v30 = vadd.f32 %v412_v36, %v411_v9 }
  0x45   : > { %v419_v48 = vadd.f32 %v418_v37, %v417_v19  ;;  %v425_v49 = vadd.f32 %v424_v39, %v423_v20  ;;  %v431_v50 = vadd.f32 %v430_v27, %v429_v32  ;;  %v437_v31 = vadd.f32 %v436_v47, %v435_v33 }
  0x46   : > { %v1752_v51 = vadd.f32 %v395_v40, %v1705_v16  ;;  %v1755_v34 = vadd.f32 %v401_v13, %v1708_v17  ;;  %v1758_v10 = vadd.f32 %v407_v29, %v1720_v44  ;;  %v1761_v15 = vadd.f32 %v413_v30, %v1723_v18 }
  0x47   : > { %v1764_v11 = vadd.f32 %v419_v48, %v1726_v45  ;;  %v1767_v22 = vadd.f32 %v425_v49, %v1729_v14  ;;  %v1770_v52 = vadd.f32 %v431_v50, %v1738_v46  ;;  %v1773_v16 = vadd.f32 %v437_v31, %v1741_v26  ;;  %v1784_v50 = vld [vmem:[%s1563_s8 + $0x10] sm:$0xff]  }
  0x48   : > { %v455_v17 = vunpack.c.h.bf16 %v1690_v28  ;;  %v456_v44 = vunpack.c.h.bf16 %v1696_v38  ;;  %v457_v53 = vunpack.c.h.bf16 %v1699_v12  ;;  %v458_v18 = vunpack.c.h.bf16 %v1711_v41  ;;  %v1787_v31 = vld [vmem:[%s1563_s8 + $0x2c] sm:$0xff]  }
  0x49   : > { %v459_v45 = vunpack.c.h.bf16 %v1714_v42  ;;  %v460_v54 = vunpack.c.h.bf16 %v1717_v43  ;;  %v461_v14 = vunpack.c.h.bf16 %v1732_v25  ;;  %v462_v46 = vunpack.c.h.bf16 %v1735_v23 }
  0x4a   : > { %v463_v55 = vrot.slane %v455_v17, 4  ;;  %v469_v56 = vrot.slane %v456_v44, 4  ;;  %v475_v26 = vrot.slane %v457_v53, 4  ;;  %v481_v57 = vrot.slane %v458_v18, 4 }
  0x4b   : > { %v487_v58 = vrot.slane %v459_v45, 4  ;;  %v493_v28 = vrot.slane %v460_v54, 4  ;;  %v499_v60 = vrot.slane %v461_v14, 4  ;;  %v505_v12 = vrot.slane %v462_v46, 4 }
  0x4c   : > { %v464_v59 = vadd.f32 %v463_v55, %v455_v17  ;;  %v470_v38 = vadd.f32 %v469_v56, %v456_v44  ;;  %v476_v61 = vadd.f32 %v475_v26, %v457_v53  ;;  %v482_v41 = vadd.f32 %v481_v57, %v458_v18  ;;  %v1790_v17 = vld [vmem:[%s1563_s8 + $0x48] sm:$0xff]   ;;  %v1823_v57 = vld [vmem:[%s1563_s8 + $0xd4] sm:$0xff]  }
  0x4d   : > { %v488_v62 = vadd.f32 %v487_v58, %v459_v45  ;;  %v494_v42 = vadd.f32 %v493_v28, %v460_v54  ;;  %v500_v0 = vadd.f32 %v499_v60, %v461_v14  ;;  %v506_v25 = vadd.f32 %v505_v12, %v462_v46  ;;  %v1799_v54 = vld [vmem:[%s1563_s8 + $0x64] sm:$0xff]   ;;  %v1805_v46 = vld [vmem:[%s1563_s8 + $0x9c] sm:$0xff]  }
  0x4e   : > { %v465_v63 = vrot.slane %v464_v59, 2  ;;  %v471_v43 = vrot.slane %v470_v38, 2  ;;  %v477_v1 = vrot.slane %v476_v61, 2  ;;  %v483_v23 = vrot.slane %v482_v41, 2  ;;  %v1802_v14 = vld [vmem:[%s1563_s8 + $0x80] sm:$0xff]  }
  0x4f   : > { %v489_v2 = vrot.slane %v488_v62, 2  ;;  %v495_v3 = vrot.slane %v494_v42, 2  ;;  %v501_v6 = vrot.slane %v500_v0, 2  ;;  %v507_v7 = vrot.slane %v506_v25, 2 }
  0x50   : > { %v466_v4 = vadd.f32 %v465_v63, %v464_v59  ;;  %v472_v5 = vadd.f32 %v471_v43, %v470_v38  ;;  %v478_v8 = vadd.f32 %v477_v1, %v476_v61  ;;  %v484_v9 = vadd.f32 %v483_v23, %v482_v41 }
  0x51   : > { %v490_v19 = vadd.f32 %v489_v2, %v488_v62  ;;  %v496_v20 = vadd.f32 %v495_v3, %v494_v42  ;;  %v502_v32 = vadd.f32 %v501_v6, %v500_v0  ;;  %v508_v33 = vadd.f32 %v507_v7, %v506_v25 }
  0x52   : > { %v467_v21 = vrot.slane %v466_v4, 1  ;;  %v473_v24 = vrot.slane %v472_v5, 1  ;;  %v479_v35 = vrot.slane %v478_v8, 1  ;;  %v485_v36 = vrot.slane %v484_v9, 1 }
  0x53   : > { %v491_v37 = vrot.slane %v490_v19, 1  ;;  %v497_v39 = vrot.slane %v496_v20, 1  ;;  %v503_v27 = vrot.slane %v502_v32, 1  ;;  %v509_v47 = vrot.slane %v508_v33, 1 }
  0x54   : > { %v468_v40 = vadd.f32 %v467_v21, %v466_v4  ;;  %v474_v13 = vadd.f32 %v473_v24, %v472_v5  ;;  %v480_v29 = vadd.f32 %v479_v35, %v478_v8  ;;  %v486_v30 = vadd.f32 %v485_v36, %v484_v9 }
  0x55   : > { %v492_v48 = vadd.f32 %v491_v37, %v490_v19  ;;  %v498_v49 = vadd.f32 %v497_v39, %v496_v20  ;;  %v504_v44 = vadd.f32 %v503_v27, %v502_v32  ;;  %v510_v53 = vadd.f32 %v509_v47, %v508_v33 }
  0x56   : > { %v1793_v18 = vadd.f32 %v468_v40, %v1752_v51  ;;  %v1796_v45 = vadd.f32 %v474_v13, %v1755_v34  ;;  %v1808_v55 = vadd.f32 %v480_v29, %v1758_v10  ;;  %v1811_v56 = vadd.f32 %v486_v30, %v1761_v15  ;;  %v1820_v34 = vld [vmem:[%s1563_s8 + $0xb8] sm:$0xff]  }
  0x57   : > { %v1814_v26 = vadd.f32 %v492_v48, %v1764_v11  ;;  %v1817_v51 = vadd.f32 %v498_v49, %v1767_v22  ;;  %v1826_v58 = vadd.f32 %v504_v44, %v1770_v52  ;;  %v1829_v28 = vadd.f32 %v510_v53, %v1773_v16 }
  0x58   : > { %v528_v10 = vunpack.c.l.bf16 %v1784_v50  ;;  %v529_v15 = vunpack.c.l.bf16 %v1787_v31  ;;  %v530_v11 = vunpack.c.l.bf16 %v1790_v17  ;;  %v531_v59 = vunpack.c.l.bf16 %v1799_v54 }
  0x59   : > { %v532_v22 = vunpack.c.l.bf16 %v1802_v14  ;;  %v533_v38 = vunpack.c.l.bf16 %v1805_v46  ;;  %v534_v60 = vunpack.c.l.bf16 %v1820_v34  ;;  %v535_v52 = vunpack.c.l.bf16 %v1823_v57 }
  0x5a   : > { %v536_v12 = vrot.slane %v528_v10, 4  ;;  %v542_v61 = vrot.slane %v529_v15, 4  ;;  %v548_v16 = vrot.slane %v530_v11, 4  ;;  %v554_v41 = vrot.slane %v531_v59, 4 }
  0x5b   : > { %v560_v62 = vrot.slane %v532_v22, 4  ;;  %v566_v42 = vrot.slane %v533_v38, 4  ;;  %v572_v0 = vrot.slane %v534_v60, 4  ;;  %v578_v25 = vrot.slane %v535_v52, 4 }
  0x5c   : > { %v537_v63 = vadd.f32 %v536_v12, %v528_v10  ;;  %v543_v43 = vadd.f32 %v542_v61, %v529_v15  ;;  %v549_v1 = vadd.f32 %v548_v16, %v530_v11  ;;  %v555_v23 = vadd.f32 %v554_v41, %v531_v59 }
  0x5d   : > { %v561_v2 = vadd.f32 %v560_v62, %v532_v22  ;;  %v567_v3 = vadd.f32 %v566_v42, %v533_v38  ;;  %v573_v6 = vadd.f32 %v572_v0, %v534_v60  ;;  %v579_v7 = vadd.f32 %v578_v25, %v535_v52 }
  0x5e   : > { %v538_v4 = vrot.slane %v537_v63, 2  ;;  %v544_v5 = vrot.slane %v543_v43, 2  ;;  %v550_v8 = vrot.slane %v549_v1, 2  ;;  %v556_v9 = vrot.slane %v555_v23, 2 }
  0x5f   : > { %v562_v19 = vrot.slane %v561_v2, 2  ;;  %v568_v20 = vrot.slane %v567_v3, 2  ;;  %v574_v32 = vrot.slane %v573_v6, 2  ;;  %v580_v33 = vrot.slane %v579_v7, 2 }
  0x60   : > { %v539_v21 = vadd.f32 %v538_v4, %v537_v63  ;;  %v545_v24 = vadd.f32 %v544_v5, %v543_v43  ;;  %v551_v35 = vadd.f32 %v550_v8, %v549_v1  ;;  %v557_v36 = vadd.f32 %v556_v9, %v555_v23 }
  0x61   : > { %v563_v37 = vadd.f32 %v562_v19, %v561_v2  ;;  %v569_v39 = vadd.f32 %v568_v20, %v567_v3  ;;  %v575_v27 = vadd.f32 %v574_v32, %v573_v6  ;;  %v581_v47 = vadd.f32 %v580_v33, %v579_v7 }
  0x62   : > { %v540_v40 = vrot.slane %v539_v21, 1  ;;  %v546_v13 = vrot.slane %v545_v24, 1  ;;  %v552_v29 = vrot.slane %v551_v35, 1  ;;  %v558_v30 = vrot.slane %v557_v36, 1 }
  0x63   : > { %v564_v48 = vrot.slane %v563_v37, 1  ;;  %v570_v49 = vrot.slane %v569_v39, 1  ;;  %v576_v10 = vrot.slane %v575_v27, 1  ;;  %v582_v15 = vrot.slane %v581_v47, 1 }
  0x64   : > { %v541_v44 = vadd.f32 %v540_v40, %v539_v21  ;;  %v547_v53 = vadd.f32 %v546_v13, %v545_v24  ;;  %v553_v11 = vadd.f32 %v552_v29, %v551_v35  ;;  %v559_v59 = vadd.f32 %v558_v30, %v557_v36 }
  0x65   : > { %v565_v22 = vadd.f32 %v564_v48, %v563_v37  ;;  %v571_v38 = vadd.f32 %v570_v49, %v569_v39  ;;  %v577_v60 = vadd.f32 %v576_v10, %v575_v27  ;;  %v583_v52 = vadd.f32 %v582_v15, %v581_v47 }
  0x66   : > { %v1840_v12 = vadd.f32 %v541_v44, %v1793_v18  ;;  %v1843_v61 = vadd.f32 %v547_v53, %v1796_v45  ;;  %v1846_v16 = vadd.f32 %v553_v11, %v1808_v55  ;;  %v1849_v41 = vadd.f32 %v559_v59, %v1811_v56 }
  0x67   : > { %v1852_v62 = vadd.f32 %v565_v22, %v1814_v26  ;;  %v1855_v42 = vadd.f32 %v571_v38, %v1817_v51  ;;  %v1858_v63 = vadd.f32 %v577_v60, %v1826_v58  ;;  %v1861_v18 = vadd.f32 %v583_v52, %v1829_v28  ;;  %v665_v60 = vld [vmem:[%s1563_s8 + $0x18] sm:$0x1]  ;;  %v666_v52 = vld [vmem:[%s1563_s8 + $0x34] sm:$0x1] }
  0x68   : > { %v601_v45 = vunpack.c.h.bf16 %v1784_v50  ;;  %v602_v55 = vunpack.c.h.bf16 %v1787_v31  ;;  %v603_v43 = vunpack.c.h.bf16 %v1790_v17  ;;  %v604_v56 = vunpack.c.h.bf16 %v1799_v54 }
  0x69   : > { %v605_v26 = vunpack.c.h.bf16 %v1802_v14  ;;  %v606_v0 = vunpack.c.h.bf16 %v1805_v46  ;;  %v607_v51 = vunpack.c.h.bf16 %v1820_v34  ;;  %v608_v58 = vunpack.c.h.bf16 %v1823_v57 }
  0x6a   : > { %v609_v25 = vrot.slane %v601_v45, 4  ;;  %v615_v1 = vrot.slane %v602_v55, 4  ;;  %v621_v28 = vrot.slane %v603_v43, 4  ;;  %v627_v23 = vrot.slane %v604_v56, 4 }
  0x6b   : > { %v633_v2 = vrot.slane %v605_v26, 4  ;;  %v639_v50 = vrot.slane %v606_v0, 4  ;;  %v645_v4 = vrot.slane %v607_v51, 4  ;;  %v651_v17 = vrot.slane %v608_v58, 4 }
  0x6c   : > { %v610_v3 = vadd.f32 %v609_v25, %v601_v45  ;;  %v616_v31 = vadd.f32 %v615_v1, %v602_v55  ;;  %v622_v5 = vadd.f32 %v621_v28, %v603_v43  ;;  %v628_v54 = vadd.f32 %v627_v23, %v604_v56  ;;  %v667_v45 = vld [vmem:[%s1563_s8 + $0x50] sm:$0x1] }
  0x6d   : > { %v634_v6 = vadd.f32 %v633_v2, %v605_v26  ;;  %v640_v14 = vadd.f32 %v639_v50, %v606_v0  ;;  %v646_v8 = vadd.f32 %v645_v4, %v607_v51  ;;  %v652_v34 = vadd.f32 %v651_v17, %v608_v58  ;;  %v668_v0 = vld [vmem:[%s1563_s8 + $0x6c] sm:$0x1]  ;;  %v669_v51 = vld [vmem:[%s1563_s8 + $0x88] sm:$0x1]  ;;  %v670_v58 = vld [vmem:[%s1563_s8 + $0xa4] sm:$0x1] }
  0x6e   : > { %v611_v7 = vrot.slane %v610_v3, 2  ;;  %v617_v46 = vrot.slane %v616_v31, 2  ;;  %v623_v9 = vrot.slane %v622_v5, 2  ;;  %v629_v57 = vrot.slane %v628_v54, 2  ;;  %v671_v2 = vld [vmem:[%s1563_s8 + $0xc0] sm:$0x1] }
  0x6f   : > { %v635_v19 = vrot.slane %v634_v6, 2  ;;  %v641_v20 = vrot.slane %v640_v14, 2  ;;  %v647_v32 = vrot.slane %v646_v8, 2  ;;  %v653_v33 = vrot.slane %v652_v34, 2  ;;  %v672_v50 = vld [vmem:[%s1563_s8 + $0xdc] sm:$0x1] }
  0x70   : > { %v612_v21 = vadd.f32 %v611_v7, %v610_v3  ;;  %v618_v24 = vadd.f32 %v617_v46, %v616_v31  ;;  %v624_v35 = vadd.f32 %v623_v9, %v622_v5  ;;  %v630_v36 = vadd.f32 %v629_v57, %v628_v54 }
  0x71   : > { %v636_v37 = vadd.f32 %v635_v19, %v634_v6  ;;  %v642_v39 = vadd.f32 %v641_v20, %v640_v14  ;;  %v648_v27 = vadd.f32 %v647_v32, %v646_v8  ;;  %v654_v47 = vadd.f32 %v653_v33, %v652_v34 }
  0x72   : > { %v613_v40 = vrot.slane %v612_v21, 1  ;;  %v619_v13 = vrot.slane %v618_v24, 1  ;;  %v625_v29 = vrot.slane %v624_v35, 1  ;;  %v631_v30 = vrot.slane %v630_v36, 1 }
  0x73   : > { %v637_v48 = vrot.slane %v636_v37, 1  ;;  %v643_v49 = vrot.slane %v642_v39, 1  ;;  %v649_v10 = vrot.slane %v648_v27, 1  ;;  %v655_v15 = vrot.slane %v654_v47, 1 }
  0x74   : > { %v614_v44 = vadd.f32 %v613_v40, %v612_v21  ;;  %v620_v53 = vadd.f32 %v619_v13, %v618_v24  ;;  %v626_v11 = vadd.f32 %v625_v29, %v624_v35  ;;  %v632_v59 = vadd.f32 %v631_v30, %v630_v36 }
  0x75   : > { %v638_v22 = vadd.f32 %v637_v48, %v636_v37  ;;  %v644_v38 = vadd.f32 %v643_v49, %v642_v39  ;;  %v650_v55 = vadd.f32 %v649_v10, %v648_v27  ;;  %v656_v43 = vadd.f32 %v655_v15, %v654_v47  ;;  %v1205_v10 = vld [vmem:[%s1952_s3 + $0x38] sm:$0xff]  }
  0x76   : > { %v657_v56 = vadd.f32 %v614_v44, %v1840_v12  ;;  %v658_v26 = vadd.f32 %v620_v53, %v1843_v61  ;;  %v659_v25 = vadd.f32 %v626_v11, %v1846_v16  ;;  %v660_v1 = vadd.f32 %v632_v59, %v1849_v41  ;;  %v1204_v44 = vld [vmem:[%s1952_s3 + $0x30] sm:$0xff]   ;;  %v1213_v53 = vld [vmem:[%s1952_s3 + $0x78] sm:$0xff]  }
  0x77   : > { %v661_v28 = vadd.f32 %v638_v22, %v1852_v62  ;;  %v662_v23 = vadd.f32 %v644_v38, %v1855_v42  ;;  %v663_v3 = vadd.f32 %v650_v55, %v1858_v63  ;;  %v664_v31 = vadd.f32 %v656_v43, %v1861_v18  ;;  %1308 = vmatpush3.bf16.msra.mxu1 %v1204_v44  ;;  %v753_v22 = vld [vmem:[%s1951_s2] sm:$0x3] }
  0x78   : > { %v673_v12 = vunpack.c.l.bf16 %v665_v60  ;;  %v674_v4 = vunpack.c.l.bf16 %v666_v52  ;;  %v675_v61 = vunpack.c.l.bf16 %v667_v45  ;;  %v676_v17 = vunpack.c.l.bf16 %v668_v0  ;;  %1310 = vmatprep.subr.bf16.mxu1 %v1213_v53 }
  0x79   : > { %v677_v5 = vunpack.c.l.bf16 %v669_v51  ;;  %v678_v54 = vunpack.c.l.bf16 %v670_v58  ;;  %v679_v6 = vunpack.c.l.bf16 %v671_v2  ;;  %v680_v16 = vunpack.c.l.bf16 %v672_v50  ;;  %v1130_v58 = vld [vmem:[%s1953_s4] ss:$0 sm:$0xff] }
  0x7a   : > { %v689_v14 = vadd.f32 %v673_v12, %v657_v56  ;;  %v690_v41 = vadd.f32 %v674_v4, %v658_v26  ;;  %v691_v7 = vadd.f32 %v675_v61, %v659_v25  ;;  %v692_v62 = vadd.f32 %v676_v17, %v660_v1 }
  0x7b   : > { %v693_v46 = vadd.f32 %v677_v5, %v661_v28  ;;  %v694_v42 = vadd.f32 %v678_v54, %v662_v23  ;;  %v695_v8 = vadd.f32 %v679_v6, %v663_v3  ;;  %v696_v34 = vadd.f32 %v680_v16, %v664_v31  ;;  %1312 = vmatpush3.bf16.msra.mxu1 %v1205_v10 }
  0x7c   : > { %v697_v9 = vmul.f32 0.020408163, %v689_v14  ;;  %v698_v63 = vmul.f32 0.020408163, %v690_v41  ;;  %v699_v57 = vmul.f32 0.020408163, %v691_v7  ;;  %v755_v15 = vlaneseq }
  0x7d   : > { %v700_v18 = vmul.f32 0.020408163, %v692_v62  ;;  %v701_v19 = vmul.f32 0.020408163, %v693_v46  ;;  %v702_v20 = vmul.f32 0.020408163, %v694_v42 }
  0x7e   : > { %v703_v21 = vmul.f32 0.020408163, %v695_v8  ;;  %v704_v24 = vmul.f32 0.020408163, %v696_v34  ;;  %v773_v32 = vrot.slane %v698_v63, 7  ;;  %v776_v33 = vrot.slane %v699_v57, 6 }
  0x7f   : > { %v779_v35 = vrot.slane %v700_v18, 5  ;;  %v782_v36 = vrot.slane %v701_v19, 4  ;;  %v785_v39 = vrot.slane %v702_v20, 3  ;;  %v756_v11 = vshrl.u32 %v755_v15, 7 }
  0x80   : > { %v775_v37 = vsel %vm774_vm0, %v773_v32, %v697_v9  ;;  %v788_v13 = vrot.slane %v703_v21, 2  ;;  %v791_v47 = vrot.slane %v704_v24, 1 }
  0x81   : > { %v778_v40 = vsel %vm777_vm1, %v776_v33, %v775_v37  ;;  %v757_v59 = vsub.s32 0, %v756_v11  ;;  %v761_v38 = vsub.s32 1, %v756_v11 }
  0x82   : > { %v781_v27 = vsel %vm780_vm2, %v779_v35, %v778_v40 }
  0x83   : > { %v784_v29 = vsel %vm783_vm3, %v782_v36, %v781_v27  ;;  %v758_v60 = vrot.slane %v753_v22, %v757_v59  ;;  %v762_v52 = vrot.slane %v753_v22, %v761_v38 }
  0x84   : > { %v787_v30 = vsel %vm786_vm4, %v785_v39, %v784_v29 }
  0x85   : > { %v790_v48 = vsel %vm789_vm5, %v788_v13, %v787_v30 }
  0x86   : > { %v793_v49 = vsel %vm792_vm6, %v791_v47, %v790_v48 }
  0x87   : > { %860 = vmatmul.mubr.f32.vlgmr.msra.gmra.mrb[0].mxu0 %v793_v49 }
 0x15a   : > { %v861_v45 = vpop.f32.mrb[0].mxu0 }
 0x15b   : > { %v862_v55 = vadd.f32 %v861_v45, %v758_v60  ;;  %v863_v43 = vpop.f32.mrb[1].mxu0 }
 0x15c   : > { %v864_v56 = vadd.f32 %v863_v43, %v762_v52 }
 0x15d   : > { %v866_v0 = vmax.f32 %v862_v55, 0.0 }
 0x15e   : > { %v867_v26 = vmax.f32 %v864_v56, 0.0 }
 0x160   : > { %1003 = vmatprep.mubr.f32.mxu1 %v867_v26 }
 0x161   : > { %1004 = vmatmul.mubr.f32.vlgmr.msra.gmra.mrb[0].mxu1 %v866_v0 }
 0x234   : > { %v1246_v51 = vpop.f32.mrb[0].mxu1 }
 0x235   : > { %v1247_v25 = vpop.f32.mrb[1].mxu1 }
 0x236   : > { %v1248_v1 = vadd.f32 %v1247_v25, %v1246_v51 }
 0x238   : > { %v1006_v28 = vadd.f32 %v1248_v1, %v1130_v58 }
 0x23a   : > { %1009 = vst [vmem:[%s220_s25] sm:$0xff] %v1006_v28 }
 0x23b   : > { %1407 = shalt.err (!%p1404_p3)
}
 0x23c   : > { %s1408_s12 = scalar_lea.hbm %s1907_s6, 128  ;;  %s1412_s15 = scalar_lea.hbm %s1954_s5, 256 }
 0x23d   : > { %p1409_p4 = scmp.ne.s32.totalorder %s1907_s6, %s1408_s12  ;;  %p1413_p9 = scmp.lt.u32.totalorder %s1907_s6, %s1954_s5 }
 0x23e   : > { %p1414_p10 = scmp.lt.u32.totalorder %s1412_s15, %s1408_s12  ;;  %p1416_p12 = scmp.lt.u32.totalorder %s1408_s12, %s1907_s6 }
 0x23f   : > { %p1410_p7 = pnand %p1409_p4, %p1528_p5 }
 0x240   : > { %p1415_p11 = por %p1414_p10, %p1413_p9 }
 0x241   : > { %p1411_p8 = pneg %p1410_p7 }
 0x242   : > { %p1417_p13 = por %p1416_p12, %p1415_p11 }
 0x244   : > { %p1418_p0 = pnand %p1417_p13, %p1411_p8 }
 0x246   : > { %1421 = shalt.err (!%p1418_p0)
}
 0x247   : > { %1330 = dma.vmem_to_hbm [thread:$0]  (%p1528_p5), %s1909_s26, 128, %s1907_s6, %s1011_s9  }
 0x248 PF: > { %p1336_p1 = scmp.ge.s32.totalorder %s1456_s21, 2  ;;  %s1036_s23 = sand.u32 1, %s1444_s18  }
 0x249   : > { %s1037_s25 = scalar_lea.sflag [#allocation3], %s1036_s23 }
 0x24a   : > { %p1333_p2 = pnand %p1336_p1, %p1532_p6 }
 0x24c   : > { %1439 = dma.done.wait (!%p1333_p2), %s1037_s25, 128  }
 0x24d   : > { %1441 = vsyncadd (!%p1333_p2), %s1037_s25, 4294967168  ;;  %p15_p3 = scmp.ge.s32.totalorder %s1515_s24, 4   ;;  %s1957_s18 = smov %s1448_s19 }
 0x24e   : > { %s1958_s19 = smov %s1452_s20  ;;  %s1959_s20 = smov %s1526_s27 }
 0x24f   : > { %s1960_s21 = smov %s1515_s24  ;;  %17 = sbr.rel (!%p15_p3) target bundleno = 3 (0x3), region = 80 }
 0x256   :  { %1042 = vsyncpa [#allocation3], 1 }
 0x257   :  { %1044 = vsyncpa [#allocation3 + $0x1], 1 }

</bundles_post_ra>
